<compile_context>
chip_gen: v5e
topology: v5e:2x2
jax: 0.10.0
libtpu: 0.0.40
codegen_flags: <defaults>
</compile_context>

<pallas_src>
import functools

import jax
import jax.numpy as jnp
import numpy as np
from jax import lax
from jax.experimental import pallas as pl
from jax.experimental.pallas import tpu as pltpu

_EPS = 1e-5
_MATMUL_DTYPE = jnp.bfloat16          # MXU operand dtype (f32 accumulation)
_FEAT_DTYPE = jnp.bfloat16            # HBM dtype of intermediate feature maps
_VMEM_FALLBACK = 64 * 1024 * 1024


def _vmem_limit_bytes():
    """~3/4 of physical VMEM, capped at 112 MiB (v5e/v6e: ~96 MiB, v7x: ~48 MiB)."""
    try:
        cap = int(getattr(pltpu.get_tpu_info(), "vmem_capacity_bytes",
                          _VMEM_FALLBACK))
    except Exception:  # pragma: no cover - conservative fallback
        cap = _VMEM_FALLBACK
    return max(32 * 1024 * 1024, min(cap * 3 // 4, 112 * 1024 * 1024))


# ---------------------------------------------------------------------------
# In-kernel helpers
# ---------------------------------------------------------------------------
def _halo_scales():
    """0/1 scalars zeroing the top/bottom halo rows that fall outside the image."""
    h = pl.program_id(1)
    top = (h > 0).astype(jnp.float32)
    bot = (h < pl.num_programs(1) - 1).astype(jnp.float32)
    return top, bot


def _conv3x3(slab_f32, w_ref, tile_h, w_dim):
    """3x3 same-conv of a (TH+2, W, Cin) f32 halo slab -> (TH*W, Cout) f32.

    kx taps are packed along the contraction dim: one bf16 (TH+2, W, 3*Cin)
    buffer (built with a single zero column), then 3 MXU matmuls of
    (TH*W, 3*Cin) x (3*Cin, Cout), one per ky, with f32 accumulation.
    """
    c_in = slab_f32.shape[-1]
    slab = slab_f32.astype(_MATMUL_DTYPE)
    zero_col = jnp.zeros((slab.shape[0], 1, c_in), _MATMUL_DTYPE)
    left = jnp.concatenate([zero_col, slab[:, : w_dim - 1, :]], axis=1)  # x[., w-1]
    right = jnp.concatenate([slab[:, 1:, :], zero_col], axis=1)          # x[., w+1]
    cat = jnp.concatenate([left, slab, right], axis=2)                   # (TH+2, W, 3C)

    w_packed = w_ref[...]                                                # (3, 3C, Cout)
    m = tile_h * w_dim
    acc = None
    for ky in range(3):
        patch = cat[ky:ky + tile_h].reshape(m, 3 * c_in)
        part = jnp.dot(patch, w_packed[ky], preferred_element_type=jnp.float32)
        acc = part if acc is None else acc + part
    return acc


def _accum_stats(st_ref, y):
    """Accumulate per-channel (sum, sum_sq) of y=(M, C) across the row-tile axis."""
    @pl.when(pl.program_id(1) == 0)
    def _():
        st_ref[...] = jnp.zeros_like(st_ref)

    ssum = jnp.sum(y, axis=0, keepdims=True)       # (1, C)
    ssq = jnp.sum(y * y, axis=0, keepdims=True)    # (1, C)
    st_ref[...] += jnp.concatenate([ssum, ssq], axis=0).reshape(1, 2, -1)


def _mean_inv_std(st, inv_hw):
    """st = (2, C) [sum, sum_sq] -> ((1, C) mean, (1, C) 1/std), f32."""
    mean = st[0:1, :] * inv_hw
    var = st[1:2, :] * inv_hw - mean * mean        # biased variance, f32
    return mean, lax.rsqrt(var + _EPS)


def _in1_relu_conv2(st1_ref, y_top, y_cur, y_bot, w_ref, inv_hw):
    """IN1 + ReLU on a halo slab of y1, then conv2 -> ((TH*W, C) f32, th, w, c)."""
    tile_h, w_dim, c = y_cur.shape[1], y_cur.shape[2], y_cur.shape[3]
    mean, inv_std = _mean_inv_std(st1_ref[0].astype(jnp.float32), inv_hw)
    mean = mean.reshape(1, 1, c)
    inv_std = inv_std.reshape(1, 1, c)

    def norm_relu(piece):                          # (rows, W, C) -> f32
        return jnp.maximum((piece.astype(jnp.float32) - mean) * inv_std, 0.0)

    top_s, bot_s = _halo_scales()
    # conv2's zero padding applies AFTER IN1+ReLU -> zero only the 1-row halos.
    top = norm_relu(y_top[0]) * top_s
    bot = norm_relu(y_bot[0]) * bot_s
    slab = jnp.concatenate([top, norm_relu(y_cur[0]), bot], axis=0)
    return _conv3x3(slab, w_ref, tile_h, w_dim), tile_h, w_dim, c


# ---------------------------------------------------------------------------
# Kernels (grid = (N, H // TILE_H))
# ---------------------------------------------------------------------------
def _conv1_kernel(x_top, x_cur, x_bot, w_ref, y_ref, st_ref):
    tile_h, w_dim = x_cur.shape[1], x_cur.shape[2]
    top_s, bot_s = _halo_scales()
    slab = jnp.concatenate([x_top[0].astype(jnp.float32) * top_s,
                            x_cur[0].astype(jnp.float32),
                            x_bot[0].astype(jnp.float32) * bot_s], axis=0)
    y = _conv3x3(slab, w_ref, tile_h, w_dim)               # (TH*W, C) f32
    y_ref[0] = y.reshape(tile_h, w_dim, -1).astype(y_ref.dtype)
    _accum_stats(st_ref, y)


def _conv2_kernel(st1, y_top, y_cur, y_bot, w_ref, y2_ref, st2_ref, *, inv_hw):
    """Materializing path (large C): IN1+ReLU+conv2, write y2 + IN2 stats."""
    y, tile_h, w_dim, c = _in1_relu_conv2(st1, y_top, y_cur, y_bot, w_ref, inv_hw)
    y2_ref[0] = y.reshape(tile_h, w_dim, c).astype(y2_ref.dtype)
    _accum_stats(st2_ref, y)


def _conv2_stats_kernel(st1, y_top, y_cur, y_bot, w_ref, st2_ref, *, inv_hw):
    """Recompute path (small C): IN1+ReLU+conv2 for IN2 stats only."""
    y, _, _, _ = _in1_relu_conv2(st1, y_top, y_cur, y_bot, w_ref, inv_hw)
    _accum_stats(st2_ref, y)


def _conv2_norm_add_kernel(st1, st2, y_top, y_cur, y_bot, w_ref, x_cur, o_ref,
                           *, inv_hw):
    """Recompute path: re-run conv2 from y1, apply IN2, add residual."""
    y, tile_h, w_dim, c = _in1_relu_conv2(st1, y_top, y_cur, y_bot, w_ref, inv_hw)
    mean2, inv_std2 = _mean_inv_std(st2[0].astype(jnp.float32), inv_hw)
    h = (y.reshape(tile_h, w_dim, c) - mean2.reshape(1, 1, c)) \
        * inv_std2.reshape(1, 1, c)
    o_ref[0] = (x_cur[0].astype(jnp.float32) + h).astype(o_ref.dtype)


def _norm_add_kernel(st2, y2_ref, x_ref, o_ref, *, inv_hw):
    """Materializing path: IN2 on y2 + residual add."""
    c = x_ref.shape[3]
    mean, inv_std = _mean_inv_std(st2[0].astype(jnp.float32), inv_hw)
    h = (y2_ref[...].astype(jnp.float32) - mean.reshape(1, 1, 1, c)) \
        * inv_std.reshape(1, 1, 1, c)
    o_ref[...] = (x_ref[...].astype(jnp.float32) + h).astype(o_ref.dtype)


# ---------------------------------------------------------------------------
# Wrapper
# ---------------------------------------------------------------------------
def _pick_tile_h(height, width, channels):
    """Largest divisor of H whose f32 block stays around ~2 MiB."""
    bytes_per_row = max(width * channels * 4, 1)
    max_rows = max(1, (2 * 1024 * 1024) // bytes_per_row)
    tile_h = 1
    for cand in range(1, height + 1):
        if height % cand == 0 and cand <= max_rows:
            tile_h = cand
    return tile_h


def residual_block(x_nchw, w1_oihw, w2_oihw, *, tile_h=None, recompute_conv2=None):
    """x: (N, C, H, W) f32; w1/w2: (C, C, 3, 3) PyTorch conv weights, no bias."""
    n, c, height, width = x_nchw.shape

    # NHWC: channels on the 128-lane axis; kx taps packed into the weight's
    # contraction dim: (ky, kx*Cin + i, o).
    x = jnp.transpose(x_nchw, (0, 2, 3, 1)).astype(jnp.float32)

    def pack_w(w_oihw):
        return jnp.transpose(w_oihw, (2, 3, 1, 0)).reshape(3, 3 * c, c) \
                  .astype(_MATMUL_DTYPE)

    w1 = pack_w(w1_oihw)
    w2 = pack_w(w2_oihw)

    th = tile_h if tile_h is not None else _pick_tile_h(height, width, c)
    if height % th != 0:
        raise ValueError(f"tile_h={th} must divide H={height}")
    ht = height // th
    inv_hw = 1.0 / float(height * width)
    if recompute_conv2 is None:
        recompute_conv2 = c <= 64          # HBM-bound regime: skip y2 round trip

    tile_spec = pl.BlockSpec((1, th, width, c), lambda i, j: (i, j, 0, 0))
    halo_top = pl.BlockSpec(
        (1, 1, width, c), lambda i, j: (i, jnp.maximum(j * th - 1, 0), 0, 0))
    halo_bot = pl.BlockSpec(
        (1, 1, width, c),
        lambda i, j: (i, jnp.minimum(j * th + th, height - 1), 0, 0))
    w_spec = pl.BlockSpec((3, 3 * c, c), lambda i, j: (0, 0, 0))
    stats_spec = pl.BlockSpec((1, 2, c), lambda i, j: (i, 0, 0))

    feat_bf16 = jax.ShapeDtypeStruct((n, height, width, c), _FEAT_DTYPE)
    out_f32 = jax.ShapeDtypeStruct((n, height, width, c), jnp.float32)
    stats = jax.ShapeDtypeStruct((n, 2, c), jnp.float32)

    vmem_limit = _vmem_limit_bytes()
    params_reduce = pltpu.CompilerParams(
        dimension_semantics=("parallel", "arbitrary"),
        vmem_limit_bytes=vmem_limit)
    params_parallel = pltpu.CompilerParams(
        dimension_semantics=("parallel", "parallel"),
        vmem_limit_bytes=vmem_limit)

    # Pass 1: conv1 (bf16 y1 to HBM) + per-channel (sum, sum_sq) for IN1.
    y1, stats1 = pl.pallas_call(
        _conv1_kernel,
        out_shape=(feat_bf16, stats),
        grid_spec=pltpu.PrefetchScalarGridSpec(
            num_scalar_prefetch=0, grid=(n, ht),
            in_specs=[halo_top, tile_spec, halo_bot, w_spec],
            out_specs=(tile_spec, stats_spec)),
        compiler_params=params_reduce,
    )(x, x, x, w1)

    if recompute_conv2:
        # Pass 2: IN1 + ReLU + conv2 -> IN2 stats only (no y2 written to HBM).
        stats2 = pl.pallas_call(
            functools.partial(_conv2_stats_kernel, inv_hw=inv_hw),
            out_shape=stats,
            grid_spec=pltpu.PrefetchScalarGridSpec(
                num_scalar_prefetch=0, grid=(n, ht),
                in_specs=[stats_spec, halo_top, tile_spec, halo_bot, w_spec],
                out_specs=stats_spec),
            compiler_params=params_reduce,
        )(stats1, y1, y1, y1, w2)

        # Pass 3: recompute conv2 from y1, apply IN2, residual add.
        out = pl.pallas_call(
            functools.partial(_conv2_norm_add_kernel, inv_hw=inv_hw),
            out_shape=out_f32,
            grid_spec=pltpu.PrefetchScalarGridSpec(
                num_scalar_prefetch=0, grid=(n, ht),
                in_specs=[stats_spec, stats_spec, halo_top, tile_spec, halo_bot,
                          w_spec, tile_spec],
                out_specs=tile_spec),
            compiler_params=params_parallel,
        )(stats1, stats2, y1, y1, y1, w2, x)
    else:
        # Pass 2: IN1 + ReLU + conv2 (bf16 y2 to HBM) + IN2 stats.
        y2, stats2 = pl.pallas_call(
            functools.partial(_conv2_kernel, inv_hw=inv_hw),
            out_shape=(feat_bf16, stats),
            grid_spec=pltpu.PrefetchScalarGridSpec(
                num_scalar_prefetch=0, grid=(n, ht),
                in_specs=[stats_spec, halo_top, tile_spec, halo_bot, w_spec],
                out_specs=(tile_spec, stats_spec)),
            compiler_params=params_reduce,
        )(stats1, y1, y1, y1, w2)

        # Pass 3: IN2 + residual add.
        out = pl.pallas_call(
            functools.partial(_norm_add_kernel, inv_hw=inv_hw),
            out_shape=out_f32,
            grid_spec=pltpu.PrefetchScalarGridSpec(
                num_scalar_prefetch=0, grid=(n, ht),
                in_specs=[stats_spec, tile_spec, tile_spec],
                out_specs=tile_spec),
            compiler_params=params_parallel,
        )(stats2, y2, x)

    return jnp.transpose(out, (0, 3, 1, 2))                # back to NCHW


# ---------------------------------------------------------------------------
# Plain-JAX f32 reference (matches the PyTorch module)
# ---------------------------------------------------------------------------
def _reference(x_nchw, w1, w2):
    def conv(x, w):
        return lax.conv_general_dilated(
            x, w, window_strides=(1, 1), padding=((1, 1), (1, 1)),
            dimension_numbers=("NCHW", "OIHW", "NCHW"))

    def inorm(y):
        mean = jnp.mean(y, axis=(2, 3), keepdims=True)
        var = jnp.mean((y - mean) ** 2, axis=(2, 3), keepdims=True)
        return (y - mean) * lax.rsqrt(var + _EPS)

    h = jnp.maximum(inorm(conv(x_nchw, w1)), 0.0)
    h = inorm(conv(h, w2))
    return x_nchw + h


if __name__ == "__main__":
    key = jax.random.PRNGKey(0)
    kx, k1, k2 = jax.random.split(key, 3)
    N, C, H, W = 2, 4, 16, 16

    x = jax.random.normal(kx, (N, C, H, W), dtype=jnp.float32)
    w1 = jax.random.normal(k1, (C, C, 3, 3), dtype=jnp.float32) * 0.1
    w2 = jax.random.normal(k2, (C, C, 3, 3), dtype=jnp.float32) * 0.1

    ref = jax.block_until_ready(_reference(x, w1, w2))

    # tile_h=4 -> 4 row tiles per image: exercises halo blocks and the
    # two-phase InstanceNorm reduction.  C=4 <= 64 -> conv2-recompute path.
    run_recompute = jax.jit(functools.partial(residual_block, tile_h=4))
    out_r = jax.block_until_ready(run_recompute(x, w1, w2))
    assert out_r.shape == (N, C, H, W)

    # Also exercise the large-C path (y2 materialized in bf16).
    run_materialize = jax.jit(functools.partial(
        residual_block, tile_h=4, recompute_conv2=False))
    out_m = jax.block_until_ready(run_materialize(x, w1, w2))

    # Tolerance headroom: two bf16-operand convs + bf16 intermediates + two
    # instance norms compound to a few 1e-2 worst case vs the f32 reference.
    np.testing.assert_allclose(np.asarray(out_r), np.asarray(ref),
                               rtol=3e-2, atol=4e-2)
    np.testing.assert_allclose(np.asarray(out_m), np.asarray(ref),
                               rtol=3e-2, atol=4e-2)
    print("KERNEL_OK")
</pallas_src>

<mosaic_0001>
module attributes {stable_mosaic.version = 11 : i64} {
  func.func @_conv1_kernel(%arg0: i32, %arg1: i32, %arg2: memref<1x1x16x4xf32, #tpu.memory_space<vmem>>, %arg3: memref<1x4x16x4xf32, #tpu.memory_space<vmem>>, %arg4: memref<1x1x16x4xf32, #tpu.memory_space<vmem>>, %arg5: memref<3x12x4xbf16, #tpu.memory_space<vmem>>, %arg6: memref<1x4x16x4xbf16, #tpu.memory_space<vmem>>, %arg7: memref<1x2x4xf32, #tpu.memory_space<vmem>>) attributes {dimension_semantics = [#tpu.dimension_semantics<parallel>, #tpu.dimension_semantics<arbitrary>], iteration_bounds = array<i64: 2, 4>, scalar_prefetch = 0 : i64, scratch_operands = 0 : i64, tpu.core_type = #tpu.core_type<tc>, window_params = [{transform_indices = @transform_0, window_bounds = array<i64: 1, 1, 16, 4>}, {transform_indices = @transform_1, window_bounds = array<i64: 1, 4, 16, 4>}, {transform_indices = @transform_2, window_bounds = array<i64: 1, 1, 16, 4>}, {pipeline_mode = #tpu.pipeline_mode<synchronous>, transform_indices = @transform_3, window_bounds = array<i64: 3, 12, 4>}, {transform_indices = @transform_4, window_bounds = array<i64: 1, 4, 16, 4>}, {transform_indices = @transform_5, window_bounds = array<i64: 1, 2, 4>}]} {
    %c0_i32 = arith.constant 0 : i32
    %0 = arith.cmpi sgt, %arg1, %c0_i32 : i32
    %1 = arith.extui %0 : i1 to i32
    %2 = arith.sitofp %1 : i32 to f32
    %c3_i32 = arith.constant 3 : i32
    %3 = arith.cmpi slt, %arg1, %c3_i32 : i32
    %4 = arith.extui %3 : i1 to i32
    %5 = arith.sitofp %4 : i32 to f32
    %c0 = arith.constant 0 : index
    %c0_0 = arith.constant 0 : index
    %c0_1 = arith.constant 0 : index
    %c0_2 = arith.constant 0 : index
    %6 = vector.load %arg2[%c0, %c0_0, %c0_1, %c0_2] : memref<1x1x16x4xf32, #tpu.memory_space<vmem>>, vector<1x1x16x4xf32>
    %7 = vector.shape_cast %6 : vector<1x1x16x4xf32> to vector<1x16x4xf32>
    %8 = vector.broadcast %2 : f32 to vector<1x16x4xf32>
    %9 = arith.mulf %7, %8 : vector<1x16x4xf32>
    %c0_3 = arith.constant 0 : index
    %c0_4 = arith.constant 0 : index
    %c0_5 = arith.constant 0 : index
    %c0_6 = arith.constant 0 : index
    %10 = vector.load %arg3[%c0_3, %c0_4, %c0_5, %c0_6] : memref<1x4x16x4xf32, #tpu.memory_space<vmem>>, vector<1x4x16x4xf32>
    %11 = vector.shape_cast %10 : vector<1x4x16x4xf32> to vector<4x16x4xf32>
    %c0_7 = arith.constant 0 : index
    %c0_8 = arith.constant 0 : index
    %c0_9 = arith.constant 0 : index
    %c0_10 = arith.constant 0 : index
    %12 = vector.load %arg4[%c0_7, %c0_8, %c0_9, %c0_10] : memref<1x1x16x4xf32, #tpu.memory_space<vmem>>, vector<1x1x16x4xf32>
    %13 = vector.shape_cast %12 : vector<1x1x16x4xf32> to vector<1x16x4xf32>
    %14 = vector.broadcast %5 : f32 to vector<1x16x4xf32>
    %15 = arith.mulf %13, %14 : vector<1x16x4xf32>
    %16 = tpu.concatenate %9, %11, %15 in 0 : vector<1x16x4xf32>, vector<4x16x4xf32>, vector<1x16x4xf32> -> vector<6x16x4xf32>
    %17 = arith.truncf %16 : vector<6x16x4xf32> to vector<6x16x4xbf16>
    %cst = arith.constant 0.000000e+00 : bf16
    %18 = vector.broadcast %cst : bf16 to vector<6x1x4xbf16>
    %19 = vector.extract_strided_slice %17 {offsets = [0, 0, 0], sizes = [6, 15, 4], strides = [1, 1, 1]} : vector<6x16x4xbf16> to vector<6x15x4xbf16>
    %20 = tpu.concatenate %18, %19 in 1 : vector<6x1x4xbf16>, vector<6x15x4xbf16> -> vector<6x16x4xbf16>
    %21 = vector.extract_strided_slice %17 {offsets = [0, 1, 0], sizes = [6, 15, 4], strides = [1, 1, 1]} : vector<6x16x4xbf16> to vector<6x15x4xbf16>
    %22 = tpu.concatenate %21, %18 in 1 : vector<6x15x4xbf16>, vector<6x1x4xbf16> -> vector<6x16x4xbf16>
    %23 = tpu.concatenate %20, %17, %22 in 2 : vector<6x16x4xbf16>, vector<6x16x4xbf16>, vector<6x16x4xbf16> -> vector<6x16x12xbf16>
    %c0_11 = arith.constant 0 : index
    %c0_12 = arith.constant 0 : index
    %c0_13 = arith.constant 0 : index
    %24 = vector.load %arg5[%c0_11, %c0_12, %c0_13] : memref<3x12x4xbf16, #tpu.memory_space<vmem>>, vector<3x12x4xbf16>
    %25 = vector.extract_strided_slice %23 {offsets = [0, 0, 0], sizes = [4, 16, 12], strides = [1, 1, 1]} : vector<6x16x12xbf16> to vector<4x16x12xbf16>
    %26 = vector.shape_cast %25 : vector<4x16x12xbf16> to vector<64x12xbf16>
    %27 = vector.extract_strided_slice %24 {offsets = [0, 0, 0], sizes = [1, 12, 4], strides = [1, 1, 1]} : vector<3x12x4xbf16> to vector<1x12x4xbf16>
    %28 = vector.shape_cast %27 : vector<1x12x4xbf16> to vector<12x4xbf16>
    %cst_14 = arith.constant dense<0.000000e+00> : vector<64x4xf32>
    %29 = tpu.matmul %26, %28, %cst_14 {dimension_numbers = #tpu.dot_dimension_numbers<[1], [0], [0], [1], [0, 0, 1, 1], [], []>} : vector<64x12xbf16>, vector<12x4xbf16>, vector<64x4xf32> -> vector<64x4xf32>
    %30 = vector.extract_strided_slice %23 {offsets = [1, 0, 0], sizes = [4, 16, 12], strides = [1, 1, 1]} : vector<6x16x12xbf16> to vector<4x16x12xbf16>
    %31 = vector.shape_cast %30 : vector<4x16x12xbf16> to vector<64x12xbf16>
    %32 = vector.extract_strided_slice %24 {offsets = [1, 0, 0], sizes = [1, 12, 4], strides = [1, 1, 1]} : vector<3x12x4xbf16> to vector<1x12x4xbf16>
    %33 = vector.shape_cast %32 : vector<1x12x4xbf16> to vector<12x4xbf16>
    %cst_15 = arith.constant dense<0.000000e+00> : vector<64x4xf32>
    %34 = tpu.matmul %31, %33, %cst_15 {dimension_numbers = #tpu.dot_dimension_numbers<[1], [0], [0], [1], [0, 0, 1, 1], [], []>} : vector<64x12xbf16>, vector<12x4xbf16>, vector<64x4xf32> -> vector<64x4xf32>
    %35 = arith.addf %29, %34 : vector<64x4xf32>
    %36 = vector.extract_strided_slice %23 {offsets = [2, 0, 0], sizes = [4, 16, 12], strides = [1, 1, 1]} : vector<6x16x12xbf16> to vector<4x16x12xbf16>
    %37 = vector.shape_cast %36 : vector<4x16x12xbf16> to vector<64x12xbf16>
    %38 = vector.extract_strided_slice %24 {offsets = [2, 0, 0], sizes = [1, 12, 4], strides = [1, 1, 1]} : vector<3x12x4xbf16> to vector<1x12x4xbf16>
    %39 = vector.shape_cast %38 : vector<1x12x4xbf16> to vector<12x4xbf16>
    %cst_16 = arith.constant dense<0.000000e+00> : vector<64x4xf32>
    %40 = tpu.matmul %37, %39, %cst_16 {dimension_numbers = #tpu.dot_dimension_numbers<[1], [0], [0], [1], [0, 0, 1, 1], [], []>} : vector<64x12xbf16>, vector<12x4xbf16>, vector<64x4xf32> -> vector<64x4xf32>
    %41 = arith.addf %35, %40 : vector<64x4xf32>
    %42 = vector.shape_cast %41 : vector<64x4xf32> to vector<4x16x4xf32>
    %43 = arith.truncf %42 : vector<4x16x4xf32> to vector<4x16x4xbf16>
    %c0_17 = arith.constant 0 : index
    %c0_18 = arith.constant 0 : index
    %c0_19 = arith.constant 0 : index
    %c0_20 = arith.constant 0 : index
    %44 = vector.load %arg6[%c0_17, %c0_18, %c0_19, %c0_20] : memref<1x4x16x4xbf16, #tpu.memory_space<vmem>>, vector<1x4x16x4xbf16>
    %45 = vector.shape_cast %44 : vector<1x4x16x4xbf16> to vector<4x16x4xbf16>
    %46 = vector.shape_cast %43 : vector<4x16x4xbf16> to vector<1x4x16x4xbf16>
    tpu.vector_store %arg6[%c0_17, %c0_18, %c0_19, %c0_20], %46 {strides = array<i32>} : memref<1x4x16x4xbf16, #tpu.memory_space<vmem>>, vector<1x4x16x4xbf16>,
    %c0_i32_21 = arith.constant 0 : i32
    %47 = arith.cmpi eq, %arg1, %c0_i32_21 : i32
    %48 = arith.extui %47 : i1 to i32
    %c0_i32_22 = arith.constant 0 : i32
    %49 = arith.cmpi ne, %48, %c0_i32_22 : i32
    scf.if %49 {
      %cst_31 = arith.constant 0.000000e+00 : f32
      %60 = vector.broadcast %cst_31 : f32 to vector<1x2x4xf32>
      %c0_32 = arith.constant 0 : index
      %c0_33 = arith.constant 0 : index
      %c0_34 = arith.constant 0 : index
      %61 = vector.load %arg7[%c0_32, %c0_33, %c0_34] : memref<1x2x4xf32, #tpu.memory_space<vmem>>, vector<1x2x4xf32>
      tpu.vector_store %arg7[%c0_32, %c0_33, %c0_34], %60 {strides = array<i32>} : memref<1x2x4xf32, #tpu.memory_space<vmem>>, vector<1x2x4xf32>,
    } else {
    }
    %cst_23 = arith.constant dense<0.000000e+00> : vector<4xf32>
    %50 = vector.multi_reduction <add>, %41, %cst_23 [0] : vector<64x4xf32> to vector<4xf32>
    %51 = vector.shape_cast %50 : vector<4xf32> to vector<1x4xf32>
    %52 = arith.mulf %41, %41 : vector<64x4xf32>
    %cst_24 = arith.constant dense<0.000000e+00> : vector<4xf32>
    %53 = vector.multi_reduction <add>, %52, %cst_24 [0] : vector<64x4xf32> to vector<4xf32>
    %54 = vector.shape_cast %53 : vector<4xf32> to vector<1x4xf32>
    %c0_25 = arith.constant 0 : index
    %c0_26 = arith.constant 0 : index
    %c0_27 = arith.constant 0 : index
    %55 = vector.load %arg7[%c0_25, %c0_26, %c0_27] : memref<1x2x4xf32, #tpu.memory_space<vmem>>, vector<1x2x4xf32>
    %56 = tpu.concatenate %51, %54 in 0 : vector<1x4xf32>, vector<1x4xf32> -> vector<2x4xf32>
    %57 = vector.shape_cast %56 : vector<2x4xf32> to vector<1x2x4xf32>
    %58 = arith.addf %55, %57 : vector<1x2x4xf32>
    %c0_28 = arith.constant 0 : index
    %c0_29 = arith.constant 0 : index
    %c0_30 = arith.constant 0 : index
    %59 = vector.load %arg7[%c0_28, %c0_29, %c0_30] : memref<1x2x4xf32, #tpu.memory_space<vmem>>, vector<1x2x4xf32>
    tpu.vector_store %arg7[%c0_28, %c0_29, %c0_30], %58 {strides = array<i32>} : memref<1x2x4xf32, #tpu.memory_space<vmem>>, vector<1x2x4xf32>,
    return
  }
  func.func @transform_0(%arg0: i32, %arg1: i32) -> (i32, i32, i32, i32) {
    %c4_i32 = arith.constant 4 : i32
    %0 = arith.muli %arg1, %c4_i32 : i32
    %c1_i32 = arith.constant 1 : i32
    %1 = arith.subi %0, %c1_i32 : i32
    %c0_i32 = arith.constant 0 : i32
    %2 = arith.maxsi %1, %c0_i32 : i32
    %c0_i32_0 = arith.constant 0 : i32
    %c0_i32_1 = arith.constant 0 : i32
    %c0_i32_2 = arith.constant 0 : i32
    return %arg0, %2, %c0_i32_0, %c0_i32_1 : i32, i32, i32, i32
  }
  func.func @transform_1(%arg0: i32, %arg1: i32) -> (i32, i32, i32, i32) {
    %c0_i32 = arith.constant 0 : i32
    %c0_i32_0 = arith.constant 0 : i32
    %c0_i32_1 = arith.constant 0 : i32
    return %arg0, %arg1, %c0_i32, %c0_i32_0 : i32, i32, i32, i32
  }
  func.func @transform_2(%arg0: i32, %arg1: i32) -> (i32, i32, i32, i32) {
    %c4_i32 = arith.constant 4 : i32
    %0 = arith.muli %arg1, %c4_i32 : i32
    %c4_i32_0 = arith.constant 4 : i32
    %1 = arith.addi %0, %c4_i32_0 : i32
    %c15_i32 = arith.constant 15 : i32
    %2 = arith.minsi %1, %c15_i32 : i32
    %c0_i32 = arith.constant 0 : i32
    %c0_i32_1 = arith.constant 0 : i32
    %c0_i32_2 = arith.constant 0 : i32
    return %arg0, %2, %c0_i32, %c0_i32_1 : i32, i32, i32, i32
  }
  func.func @transform_3(%arg0: i32, %arg1: i32) -> (i32, i32, i32) {
    %c0_i32 = arith.constant 0 : i32
    %c0_i32_0 = arith.constant 0 : i32
    %c0_i32_1 = arith.constant 0 : i32
    %c0_i32_2 = arith.constant 0 : i32
    return %c0_i32, %c0_i32_0, %c0_i32_1 : i32, i32, i32
  }
  func.func @transform_4(%arg0: i32, %arg1: i32) -> (i32, i32, i32, i32) {
    %c0_i32 = arith.constant 0 : i32
    %c0_i32_0 = arith.constant 0 : i32
    %c0_i32_1 = arith.constant 0 : i32
    return %arg0, %arg1, %c0_i32, %c0_i32_0 : i32, i32, i32, i32
  }
  func.func @transform_5(%arg0: i32, %arg1: i32) -> (i32, i32, i32) {
    %c0_i32 = arith.constant 0 : i32
    %c0_i32_0 = arith.constant 0 : i32
    %c0_i32_1 = arith.constant 0 : i32
    return %arg0, %c0_i32, %c0_i32_0 : i32, i32, i32
  }
}

module attributes {stable_mosaic.version = 11 : i64} {
  func.func @_conv2_stats_kernel(%arg0: i32, %arg1: i32, %arg2: memref<1x2x4xf32, #tpu.memory_space<vmem>>, %arg3: memref<1x1x16x4xbf16, #tpu.memory_space<vmem>>, %arg4: memref<1x4x16x4xbf16, #tpu.memory_space<vmem>>, %arg5: memref<1x1x16x4xbf16, #tpu.memory_space<vmem>>, %arg6: memref<3x12x4xbf16, #tpu.memory_space<vmem>>, %arg7: memref<1x2x4xf32, #tpu.memory_space<vmem>>) attributes {dimension_semantics = [#tpu.dimension_semantics<parallel>, #tpu.dimension_semantics<arbitrary>], iteration_bounds = array<i64: 2, 4>, scalar_prefetch = 0 : i64, scratch_operands = 0 : i64, tpu.core_type = #tpu.core_type<tc>, window_params = [{transform_indices = @transform_0, window_bounds = array<i64: 1, 2, 4>}, {transform_indices = @transform_1, window_bounds = array<i64: 1, 1, 16, 4>}, {transform_indices = @transform_2, window_bounds = array<i64: 1, 4, 16, 4>}, {transform_indices = @transform_3, window_bounds = array<i64: 1, 1, 16, 4>}, {pipeline_mode = #tpu.pipeline_mode<synchronous>, transform_indices = @transform_4, window_bounds = array<i64: 3, 12, 4>}, {transform_indices = @transform_5, window_bounds = array<i64: 1, 2, 4>}]} {
    %c0 = arith.constant 0 : index
    %c0_0 = arith.constant 0 : index
    %c0_1 = arith.constant 0 : index
    %0 = vector.load %arg2[%c0, %c0_0, %c0_1] : memref<1x2x4xf32, #tpu.memory_space<vmem>>, vector<1x2x4xf32>
    %1 = vector.shape_cast %0 : vector<1x2x4xf32> to vector<2x4xf32>
    %2 = vector.extract_strided_slice %1 {offsets = [0, 0], sizes = [1, 4], strides = [1, 1]} : vector<2x4xf32> to vector<1x4xf32>
    %cst = arith.constant 3.906250e-03 : f32
    %3 = vector.broadcast %cst : f32 to vector<1x4xf32>
    %4 = arith.mulf %2, %3 : vector<1x4xf32>
    %5 = vector.extract_strided_slice %1 {offsets = [1, 0], sizes = [1, 4], strides = [1, 1]} : vector<2x4xf32> to vector<1x4xf32>
    %cst_2 = arith.constant 3.906250e-03 : f32
    %6 = vector.broadcast %cst_2 : f32 to vector<1x4xf32>
    %7 = arith.mulf %5, %6 : vector<1x4xf32>
    %8 = arith.mulf %4, %4 : vector<1x4xf32>
    %9 = arith.subf %7, %8 : vector<1x4xf32>
    %cst_3 = arith.constant 9.99999974E-6 : f32
    %10 = vector.broadcast %cst_3 : f32 to vector<1x4xf32>
    %11 = arith.addf %9, %10 : vector<1x4xf32>
    %12 = math.rsqrt %11 : vector<1x4xf32>
    %13 = vector.shape_cast %4 : vector<1x4xf32> to vector<1x1x4xf32>
    %14 = vector.shape_cast %12 : vector<1x4xf32> to vector<1x1x4xf32>
    %c0_i32 = arith.constant 0 : i32
    %15 = arith.cmpi sgt, %arg1, %c0_i32 : i32
    %16 = arith.extui %15 : i1 to i32
    %17 = arith.sitofp %16 : i32 to f32
    %c3_i32 = arith.constant 3 : i32
    %18 = arith.cmpi slt, %arg1, %c3_i32 : i32
    %19 = arith.extui %18 : i1 to i32
    %20 = arith.sitofp %19 : i32 to f32
    %c0_4 = arith.constant 0 : index
    %c0_5 = arith.constant 0 : index
    %c0_6 = arith.constant 0 : index
    %c0_7 = arith.constant 0 : index
    %21 = vector.load %arg3[%c0_4, %c0_5, %c0_6, %c0_7] : memref<1x1x16x4xbf16, #tpu.memory_space<vmem>>, vector<1x1x16x4xbf16>
    %22 = vector.shape_cast %21 : vector<1x1x16x4xbf16> to vector<1x16x4xbf16>
    %23 = arith.extf %22 : vector<1x16x4xbf16> to vector<1x16x4xf32>
    %24 = vector.broadcast %13 : vector<1x1x4xf32> to vector<1x16x4xf32>
    %25 = arith.subf %23, %24 : vector<1x16x4xf32>
    %26 = vector.broadcast %14 : vector<1x1x4xf32> to vector<1x16x4xf32>
    %27 = arith.mulf %25, %26 : vector<1x16x4xf32>
    %cst_8 = arith.constant 0.000000e+00 : f32
    %28 = vector.broadcast %cst_8 : f32 to vector<1x16x4xf32>
    %29 = arith.maximumf %27, %28 : vector<1x16x4xf32>
    %30 = vector.broadcast %17 : f32 to vector<1x16x4xf32>
    %31 = arith.mulf %29, %30 : vector<1x16x4xf32>
    %c0_9 = arith.constant 0 : index
    %c0_10 = arith.constant 0 : index
    %c0_11 = arith.constant 0 : index
    %c0_12 = arith.constant 0 : index
    %32 = vector.load %arg5[%c0_9, %c0_10, %c0_11, %c0_12] : memref<1x1x16x4xbf16, #tpu.memory_space<vmem>>, vector<1x1x16x4xbf16>
    %33 = vector.shape_cast %32 : vector<1x1x16x4xbf16> to vector<1x16x4xbf16>
    %34 = arith.extf %33 : vector<1x16x4xbf16> to vector<1x16x4xf32>
    %35 = vector.broadcast %13 : vector<1x1x4xf32> to vector<1x16x4xf32>
    %36 = arith.subf %34, %35 : vector<1x16x4xf32>
    %37 = vector.broadcast %14 : vector<1x1x4xf32> to vector<1x16x4xf32>
    %38 = arith.mulf %36, %37 : vector<1x16x4xf32>
    %cst_13 = arith.constant 0.000000e+00 : f32
    %39 = vector.broadcast %cst_13 : f32 to vector<1x16x4xf32>
    %40 = arith.maximumf %38, %39 : vector<1x16x4xf32>
    %41 = vector.broadcast %20 : f32 to vector<1x16x4xf32>
    %42 = arith.mulf %40, %41 : vector<1x16x4xf32>
    %c0_14 = arith.constant 0 : index
    %c0_15 = arith.constant 0 : index
    %c0_16 = arith.constant 0 : index
    %c0_17 = arith.constant 0 : index
    %43 = vector.load %arg4[%c0_14, %c0_15, %c0_16, %c0_17] : memref<1x4x16x4xbf16, #tpu.memory_space<vmem>>, vector<1x4x16x4xbf16>
    %44 = vector.shape_cast %43 : vector<1x4x16x4xbf16> to vector<4x16x4xbf16>
    %45 = arith.extf %44 : vector<4x16x4xbf16> to vector<4x16x4xf32>
    %46 = vector.broadcast %13 : vector<1x1x4xf32> to vector<4x16x4xf32>
    %47 = arith.subf %45, %46 : vector<4x16x4xf32>
    %48 = vector.broadcast %14 : vector<1x1x4xf32> to vector<4x16x4xf32>
    %49 = arith.mulf %47, %48 : vector<4x16x4xf32>
    %cst_18 = arith.constant 0.000000e+00 : f32
    %50 = vector.broadcast %cst_18 : f32 to vector<4x16x4xf32>
    %51 = arith.maximumf %49, %50 : vector<4x16x4xf32>
    %52 = tpu.concatenate %31, %51, %42 in 0 : vector<1x16x4xf32>, vector<4x16x4xf32>, vector<1x16x4xf32> -> vector<6x16x4xf32>
    %53 = arith.truncf %52 : vector<6x16x4xf32> to vector<6x16x4xbf16>
    %cst_19 = arith.constant 0.000000e+00 : bf16
    %54 = vector.broadcast %cst_19 : bf16 to vector<6x1x4xbf16>
    %55 = vector.extract_strided_slice %53 {offsets = [0, 0, 0], sizes = [6, 15, 4], strides = [1, 1, 1]} : vector<6x16x4xbf16> to vector<6x15x4xbf16>
    %56 = tpu.concatenate %54, %55 in 1 : vector<6x1x4xbf16>, vector<6x15x4xbf16> -> vector<6x16x4xbf16>
    %57 = vector.extract_strided_slice %53 {offsets = [0, 1, 0], sizes = [6, 15, 4], strides = [1, 1, 1]} : vector<6x16x4xbf16> to vector<6x15x4xbf16>
    %58 = tpu.concatenate %57, %54 in 1 : vector<6x15x4xbf16>, vector<6x1x4xbf16> -> vector<6x16x4xbf16>
    %59 = tpu.concatenate %56, %53, %58 in 2 : vector<6x16x4xbf16>, vector<6x16x4xbf16>, vector<6x16x4xbf16> -> vector<6x16x12xbf16>
    %c0_20 = arith.constant 0 : index
    %c0_21 = arith.constant 0 : index
    %c0_22 = arith.constant 0 : index
    %60 = vector.load %arg6[%c0_20, %c0_21, %c0_22] : memref<3x12x4xbf16, #tpu.memory_space<vmem>>, vector<3x12x4xbf16>
    %61 = vector.extract_strided_slice %59 {offsets = [0, 0, 0], sizes = [4, 16, 12], strides = [1, 1, 1]} : vector<6x16x12xbf16> to vector<4x16x12xbf16>
    %62 = vector.shape_cast %61 : vector<4x16x12xbf16> to vector<64x12xbf16>
    %63 = vector.extract_strided_slice %60 {offsets = [0, 0, 0], sizes = [1, 12, 4], strides = [1, 1, 1]} : vector<3x12x4xbf16> to vector<1x12x4xbf16>
    %64 = vector.shape_cast %63 : vector<1x12x4xbf16> to vector<12x4xbf16>
    %cst_23 = arith.constant dense<0.000000e+00> : vector<64x4xf32>
    %65 = tpu.matmul %62, %64, %cst_23 {dimension_numbers = #tpu.dot_dimension_numbers<[1], [0], [0], [1], [0, 0, 1, 1], [], []>} : vector<64x12xbf16>, vector<12x4xbf16>, vector<64x4xf32> -> vector<64x4xf32>
    %66 = vector.extract_strided_slice %59 {offsets = [1, 0, 0], sizes = [4, 16, 12], strides = [1, 1, 1]} : vector<6x16x12xbf16> to vector<4x16x12xbf16>
    %67 = vector.shape_cast %66 : vector<4x16x12xbf16> to vector<64x12xbf16>
    %68 = vector.extract_strided_slice %60 {offsets = [1, 0, 0], sizes = [1, 12, 4], strides = [1, 1, 1]} : vector<3x12x4xbf16> to vector<1x12x4xbf16>
    %69 = vector.shape_cast %68 : vector<1x12x4xbf16> to vector<12x4xbf16>
    %cst_24 = arith.constant dense<0.000000e+00> : vector<64x4xf32>
    %70 = tpu.matmul %67, %69, %cst_24 {dimension_numbers = #tpu.dot_dimension_numbers<[1], [0], [0], [1], [0, 0, 1, 1], [], []>} : vector<64x12xbf16>, vector<12x4xbf16>, vector<64x4xf32> -> vector<64x4xf32>
    %71 = arith.addf %65, %70 : vector<64x4xf32>
    %72 = vector.extract_strided_slice %59 {offsets = [2, 0, 0], sizes = [4, 16, 12], strides = [1, 1, 1]} : vector<6x16x12xbf16> to vector<4x16x12xbf16>
    %73 = vector.shape_cast %72 : vector<4x16x12xbf16> to vector<64x12xbf16>
    %74 = vector.extract_strided_slice %60 {offsets = [2, 0, 0], sizes = [1, 12, 4], strides = [1, 1, 1]} : vector<3x12x4xbf16> to vector<1x12x4xbf16>
    %75 = vector.shape_cast %74 : vector<1x12x4xbf16> to vector<12x4xbf16>
    %cst_25 = arith.constant dense<0.000000e+00> : vector<64x4xf32>
    %76 = tpu.matmul %73, %75, %cst_25 {dimension_numbers = #tpu.dot_dimension_numbers<[1], [0], [0], [1], [0, 0, 1, 1], [], []>} : vector<64x12xbf16>, vector<12x4xbf16>, vector<64x4xf32> -> vector<64x4xf32>
    %77 = arith.addf %71, %76 : vector<64x4xf32>
    %c0_i32_26 = arith.constant 0 : i32
    %78 = arith.cmpi eq, %arg1, %c0_i32_26 : i32
    %79 = arith.extui %78 : i1 to i32
    %c0_i32_27 = arith.constant 0 : i32
    %80 = arith.cmpi ne, %79, %c0_i32_27 : i32
    scf.if %80 {
      %cst_36 = arith.constant 0.000000e+00 : f32
      %91 = vector.broadcast %cst_36 : f32 to vector<1x2x4xf32>
      %c0_37 = arith.constant 0 : index
      %c0_38 = arith.constant 0 : index
      %c0_39 = arith.constant 0 : index
      %92 = vector.load %arg7[%c0_37, %c0_38, %c0_39] : memref<1x2x4xf32, #tpu.memory_space<vmem>>, vector<1x2x4xf32>
      tpu.vector_store %arg7[%c0_37, %c0_38, %c0_39], %91 {strides = array<i32>} : memref<1x2x4xf32, #tpu.memory_space<vmem>>, vector<1x2x4xf32>,
    } else {
    }
    %cst_28 = arith.constant dense<0.000000e+00> : vector<4xf32>
    %81 = vector.multi_reduction <add>, %77, %cst_28 [0] : vector<64x4xf32> to vector<4xf32>
    %82 = vector.shape_cast %81 : vector<4xf32> to vector<1x4xf32>
    %83 = arith.mulf %77, %77 : vector<64x4xf32>
    %cst_29 = arith.constant dense<0.000000e+00> : vector<4xf32>
    %84 = vector.multi_reduction <add>, %83, %cst_29 [0] : vector<64x4xf32> to vector<4xf32>
    %85 = vector.shape_cast %84 : vector<4xf32> to vector<1x4xf32>
    %c0_30 = arith.constant 0 : index
    %c0_31 = arith.constant 0 : index
    %c0_32 = arith.constant 0 : index
    %86 = vector.load %arg7[%c0_30, %c0_31, %c0_32] : memref<1x2x4xf32, #tpu.memory_space<vmem>>, vector<1x2x4xf32>
    %87 = tpu.concatenate %82, %85 in 0 : vector<1x4xf32>, vector<1x4xf32> -> vector<2x4xf32>
    %88 = vector.shape_cast %87 : vector<2x4xf32> to vector<1x2x4xf32>
    %89 = arith.addf %86, %88 : vector<1x2x4xf32>
    %c0_33 = arith.constant 0 : index
    %c0_34 = arith.constant 0 : index
    %c0_35 = arith.constant 0 : index
    %90 = vector.load %arg7[%c0_33, %c0_34, %c0_35] : memref<1x2x4xf32, #tpu.memory_space<vmem>>, vector<1x2x4xf32>
    tpu.vector_store %arg7[%c0_33, %c0_34, %c0_35], %89 {strides = array<i32>} : memref<1x2x4xf32, #tpu.memory_space<vmem>>, vector<1x2x4xf32>,
    return
  }
  func.func @transform_0(%arg0: i32, %arg1: i32) -> (i32, i32, i32) {
    %c0_i32 = arith.constant 0 : i32
    %c0_i32_0 = arith.constant 0 : i32
    %c0_i32_1 = arith.constant 0 : i32
    return %arg0, %c0_i32, %c0_i32_0 : i32, i32, i32
  }
  func.func @transform_1(%arg0: i32, %arg1: i32) -> (i32, i32, i32, i32) {
    %c4_i32 = arith.constant 4 : i32
    %0 = arith.muli %arg1, %c4_i32 : i32
    %c1_i32 = arith.constant 1 : i32
    %1 = arith.subi %0, %c1_i32 : i32
    %c0_i32 = arith.constant 0 : i32
    %2 = arith.maxsi %1, %c0_i32 : i32
    %c0_i32_0 = arith.constant 0 : i32
    %c0_i32_1 = arith.constant 0 : i32
    %c0_i32_2 = arith.constant 0 : i32
    return %arg0, %2, %c0_i32_0, %c0_i32_1 : i32, i32, i32, i32
  }
  func.func @transform_2(%arg0: i32, %arg1: i32) -> (i32, i32, i32, i32) {
    %c0_i32 = arith.constant 0 : i32
    %c0_i32_0 = arith.constant 0 : i32
    %c0_i32_1 = arith.constant 0 : i32
    return %arg0, %arg1, %c0_i32, %c0_i32_0 : i32, i32, i32, i32
  }
  func.func @transform_3(%arg0: i32, %arg1: i32) -> (i32, i32, i32, i32) {
    %c4_i32 = arith.constant 4 : i32
    %0 = arith.muli %arg1, %c4_i32 : i32
    %c4_i32_0 = arith.constant 4 : i32
    %1 = arith.addi %0, %c4_i32_0 : i32
    %c15_i32 = arith.constant 15 : i32
    %2 = arith.minsi %1, %c15_i32 : i32
    %c0_i32 = arith.constant 0 : i32
    %c0_i32_1 = arith.constant 0 : i32
    %c0_i32_2 = arith.constant 0 : i32
    return %arg0, %2, %c0_i32, %c0_i32_1 : i32, i32, i32, i32
  }
  func.func @transform_4(%arg0: i32, %arg1: i32) -> (i32, i32, i32) {
    %c0_i32 = arith.constant 0 : i32
    %c0_i32_0 = arith.constant 0 : i32
    %c0_i32_1 = arith.constant 0 : i32
    %c0_i32_2 = arith.constant 0 : i32
    return %c0_i32, %c0_i32_0, %c0_i32_1 : i32, i32, i32
  }
  func.func @transform_5(%arg0: i32, %arg1: i32) -> (i32, i32, i32) {
    %c0_i32 = arith.constant 0 : i32
    %c0_i32_0 = arith.constant 0 : i32
    %c0_i32_1 = arith.constant 0 : i32
    return %arg0, %c0_i32, %c0_i32_0 : i32, i32, i32
  }
}

module attributes {stable_mosaic.version = 11 : i64} {
  func.func @_conv2_norm_add_kernel(%arg0: i32, %arg1: i32, %arg2: memref<1x2x4xf32, #tpu.memory_space<vmem>>, %arg3: memref<1x2x4xf32, #tpu.memory_space<vmem>>, %arg4: memref<1x1x16x4xbf16, #tpu.memory_space<vmem>>, %arg5: memref<1x4x16x4xbf16, #tpu.memory_space<vmem>>, %arg6: memref<1x1x16x4xbf16, #tpu.memory_space<vmem>>, %arg7: memref<3x12x4xbf16, #tpu.memory_space<vmem>>, %arg8: memref<1x4x16x4xf32, #tpu.memory_space<vmem>>, %arg9: memref<1x4x16x4xf32, #tpu.memory_space<vmem>>) attributes {dimension_semantics = [#tpu.dimension_semantics<parallel>, #tpu.dimension_semantics<parallel>], iteration_bounds = array<i64: 2, 4>, scalar_prefetch = 0 : i64, scratch_operands = 0 : i64, tpu.core_type = #tpu.core_type<tc>, window_params = [{transform_indices = @transform_0, window_bounds = array<i64: 1, 2, 4>}, {transform_indices = @transform_1, window_bounds = array<i64: 1, 2, 4>}, {transform_indices = @transform_2, window_bounds = array<i64: 1, 1, 16, 4>}, {transform_indices = @transform_3, window_bounds = array<i64: 1, 4, 16, 4>}, {transform_indices = @transform_4, window_bounds = array<i64: 1, 1, 16, 4>}, {pipeline_mode = #tpu.pipeline_mode<synchronous>, transform_indices = @transform_5, window_bounds = array<i64: 3, 12, 4>}, {transform_indices = @transform_6, window_bounds = array<i64: 1, 4, 16, 4>}, {transform_indices = @transform_7, window_bounds = array<i64: 1, 4, 16, 4>}]} {
    %c0 = arith.constant 0 : index
    %c0_0 = arith.constant 0 : index
    %c0_1 = arith.constant 0 : index
    %0 = vector.load %arg2[%c0, %c0_0, %c0_1] : memref<1x2x4xf32, #tpu.memory_space<vmem>>, vector<1x2x4xf32>
    %1 = vector.shape_cast %0 : vector<1x2x4xf32> to vector<2x4xf32>
    %2 = vector.extract_strided_slice %1 {offsets = [0, 0], sizes = [1, 4], strides = [1, 1]} : vector<2x4xf32> to vector<1x4xf32>
    %cst = arith.constant 3.906250e-03 : f32
    %3 = vector.broadcast %cst : f32 to vector<1x4xf32>
    %4 = arith.mulf %2, %3 : vector<1x4xf32>
    %5 = vector.extract_strided_slice %1 {offsets = [1, 0], sizes = [1, 4], strides = [1, 1]} : vector<2x4xf32> to vector<1x4xf32>
    %cst_2 = arith.constant 3.906250e-03 : f32
    %6 = vector.broadcast %cst_2 : f32 to vector<1x4xf32>
    %7 = arith.mulf %5, %6 : vector<1x4xf32>
    %8 = arith.mulf %4, %4 : vector<1x4xf32>
    %9 = arith.subf %7, %8 : vector<1x4xf32>
    %cst_3 = arith.constant 9.99999974E-6 : f32
    %10 = vector.broadcast %cst_3 : f32 to vector<1x4xf32>
    %11 = arith.addf %9, %10 : vector<1x4xf32>
    %12 = math.rsqrt %11 : vector<1x4xf32>
    %13 = vector.shape_cast %4 : vector<1x4xf32> to vector<1x1x4xf32>
    %14 = vector.shape_cast %12 : vector<1x4xf32> to vector<1x1x4xf32>
    %c0_i32 = arith.constant 0 : i32
    %15 = arith.cmpi sgt, %arg1, %c0_i32 : i32
    %16 = arith.extui %15 : i1 to i32
    %17 = arith.sitofp %16 : i32 to f32
    %c3_i32 = arith.constant 3 : i32
    %18 = arith.cmpi slt, %arg1, %c3_i32 : i32
    %19 = arith.extui %18 : i1 to i32
    %20 = arith.sitofp %19 : i32 to f32
    %c0_4 = arith.constant 0 : index
    %c0_5 = arith.constant 0 : index
    %c0_6 = arith.constant 0 : index
    %c0_7 = arith.constant 0 : index
    %21 = vector.load %arg4[%c0_4, %c0_5, %c0_6, %c0_7] : memref<1x1x16x4xbf16, #tpu.memory_space<vmem>>, vector<1x1x16x4xbf16>
    %22 = vector.shape_cast %21 : vector<1x1x16x4xbf16> to vector<1x16x4xbf16>
    %23 = arith.extf %22 : vector<1x16x4xbf16> to vector<1x16x4xf32>
    %24 = vector.broadcast %13 : vector<1x1x4xf32> to vector<1x16x4xf32>
    %25 = arith.subf %23, %24 : vector<1x16x4xf32>
    %26 = vector.broadcast %14 : vector<1x1x4xf32> to vector<1x16x4xf32>
    %27 = arith.mulf %25, %26 : vector<1x16x4xf32>
    %cst_8 = arith.constant 0.000000e+00 : f32
    %28 = vector.broadcast %cst_8 : f32 to vector<1x16x4xf32>
    %29 = arith.maximumf %27, %28 : vector<1x16x4xf32>
    %30 = vector.broadcast %17 : f32 to vector<1x16x4xf32>
    %31 = arith.mulf %29, %30 : vector<1x16x4xf32>
    %c0_9 = arith.constant 0 : index
    %c0_10 = arith.constant 0 : index
    %c0_11 = arith.constant 0 : index
    %c0_12 = arith.constant 0 : index
    %32 = vector.load %arg6[%c0_9, %c0_10, %c0_11, %c0_12] : memref<1x1x16x4xbf16, #tpu.memory_space<vmem>>, vector<1x1x16x4xbf16>
    %33 = vector.shape_cast %32 : vector<1x1x16x4xbf16> to vector<1x16x4xbf16>
    %34 = arith.extf %33 : vector<1x16x4xbf16> to vector<1x16x4xf32>
    %35 = vector.broadcast %13 : vector<1x1x4xf32> to vector<1x16x4xf32>
    %36 = arith.subf %34, %35 : vector<1x16x4xf32>
    %37 = vector.broadcast %14 : vector<1x1x4xf32> to vector<1x16x4xf32>
    %38 = arith.mulf %36, %37 : vector<1x16x4xf32>
    %cst_13 = arith.constant 0.000000e+00 : f32
    %39 = vector.broadcast %cst_13 : f32 to vector<1x16x4xf32>
    %40 = arith.maximumf %38, %39 : vector<1x16x4xf32>
    %41 = vector.broadcast %20 : f32 to vector<1x16x4xf32>
    %42 = arith.mulf %40, %41 : vector<1x16x4xf32>
    %c0_14 = arith.constant 0 : index
    %c0_15 = arith.constant 0 : index
    %c0_16 = arith.constant 0 : index
    %c0_17 = arith.constant 0 : index
    %43 = vector.load %arg5[%c0_14, %c0_15, %c0_16, %c0_17] : memref<1x4x16x4xbf16, #tpu.memory_space<vmem>>, vector<1x4x16x4xbf16>
    %44 = vector.shape_cast %43 : vector<1x4x16x4xbf16> to vector<4x16x4xbf16>
    %45 = arith.extf %44 : vector<4x16x4xbf16> to vector<4x16x4xf32>
    %46 = vector.broadcast %13 : vector<1x1x4xf32> to vector<4x16x4xf32>
    %47 = arith.subf %45, %46 : vector<4x16x4xf32>
    %48 = vector.broadcast %14 : vector<1x1x4xf32> to vector<4x16x4xf32>
    %49 = arith.mulf %47, %48 : vector<4x16x4xf32>
    %cst_18 = arith.constant 0.000000e+00 : f32
    %50 = vector.broadcast %cst_18 : f32 to vector<4x16x4xf32>
    %51 = arith.maximumf %49, %50 : vector<4x16x4xf32>
    %52 = tpu.concatenate %31, %51, %42 in 0 : vector<1x16x4xf32>, vector<4x16x4xf32>, vector<1x16x4xf32> -> vector<6x16x4xf32>
    %53 = arith.truncf %52 : vector<6x16x4xf32> to vector<6x16x4xbf16>
    %cst_19 = arith.constant 0.000000e+00 : bf16
    %54 = vector.broadcast %cst_19 : bf16 to vector<6x1x4xbf16>
    %55 = vector.extract_strided_slice %53 {offsets = [0, 0, 0], sizes = [6, 15, 4], strides = [1, 1, 1]} : vector<6x16x4xbf16> to vector<6x15x4xbf16>
    %56 = tpu.concatenate %54, %55 in 1 : vector<6x1x4xbf16>, vector<6x15x4xbf16> -> vector<6x16x4xbf16>
    %57 = vector.extract_strided_slice %53 {offsets = [0, 1, 0], sizes = [6, 15, 4], strides = [1, 1, 1]} : vector<6x16x4xbf16> to vector<6x15x4xbf16>
    %58 = tpu.concatenate %57, %54 in 1 : vector<6x15x4xbf16>, vector<6x1x4xbf16> -> vector<6x16x4xbf16>
    %59 = tpu.concatenate %56, %53, %58 in 2 : vector<6x16x4xbf16>, vector<6x16x4xbf16>, vector<6x16x4xbf16> -> vector<6x16x12xbf16>
    %c0_20 = arith.constant 0 : index
    %c0_21 = arith.constant 0 : index
    %c0_22 = arith.constant 0 : index
    %60 = vector.load %arg7[%c0_20, %c0_21, %c0_22] : memref<3x12x4xbf16, #tpu.memory_space<vmem>>, vector<3x12x4xbf16>
    %61 = vector.extract_strided_slice %59 {offsets = [0, 0, 0], sizes = [4, 16, 12], strides = [1, 1, 1]} : vector<6x16x12xbf16> to vector<4x16x12xbf16>
    %62 = vector.shape_cast %61 : vector<4x16x12xbf16> to vector<64x12xbf16>
    %63 = vector.extract_strided_slice %60 {offsets = [0, 0, 0], sizes = [1, 12, 4], strides = [1, 1, 1]} : vector<3x12x4xbf16> to vector<1x12x4xbf16>
    %64 = vector.shape_cast %63 : vector<1x12x4xbf16> to vector<12x4xbf16>
    %cst_23 = arith.constant dense<0.000000e+00> : vector<64x4xf32>
    %65 = tpu.matmul %62, %64, %cst_23 {dimension_numbers = #tpu.dot_dimension_numbers<[1], [0], [0], [1], [0, 0, 1, 1], [], []>} : vector<64x12xbf16>, vector<12x4xbf16>, vector<64x4xf32> -> vector<64x4xf32>
    %66 = vector.extract_strided_slice %59 {offsets = [1, 0, 0], sizes = [4, 16, 12], strides = [1, 1, 1]} : vector<6x16x12xbf16> to vector<4x16x12xbf16>
    %67 = vector.shape_cast %66 : vector<4x16x12xbf16> to vector<64x12xbf16>
    %68 = vector.extract_strided_slice %60 {offsets = [1, 0, 0], sizes = [1, 12, 4], strides = [1, 1, 1]} : vector<3x12x4xbf16> to vector<1x12x4xbf16>
    %69 = vector.shape_cast %68 : vector<1x12x4xbf16> to vector<12x4xbf16>
    %cst_24 = arith.constant dense<0.000000e+00> : vector<64x4xf32>
    %70 = tpu.matmul %67, %69, %cst_24 {dimension_numbers = #tpu.dot_dimension_numbers<[1], [0], [0], [1], [0, 0, 1, 1], [], []>} : vector<64x12xbf16>, vector<12x4xbf16>, vector<64x4xf32> -> vector<64x4xf32>
    %71 = arith.addf %65, %70 : vector<64x4xf32>
    %72 = vector.extract_strided_slice %59 {offsets = [2, 0, 0], sizes = [4, 16, 12], strides = [1, 1, 1]} : vector<6x16x12xbf16> to vector<4x16x12xbf16>
    %73 = vector.shape_cast %72 : vector<4x16x12xbf16> to vector<64x12xbf16>
    %74 = vector.extract_strided_slice %60 {offsets = [2, 0, 0], sizes = [1, 12, 4], strides = [1, 1, 1]} : vector<3x12x4xbf16> to vector<1x12x4xbf16>
    %75 = vector.shape_cast %74 : vector<1x12x4xbf16> to vector<12x4xbf16>
    %cst_25 = arith.constant dense<0.000000e+00> : vector<64x4xf32>
    %76 = tpu.matmul %73, %75, %cst_25 {dimension_numbers = #tpu.dot_dimension_numbers<[1], [0], [0], [1], [0, 0, 1, 1], [], []>} : vector<64x12xbf16>, vector<12x4xbf16>, vector<64x4xf32> -> vector<64x4xf32>
    %77 = arith.addf %71, %76 : vector<64x4xf32>
    %c0_26 = arith.constant 0 : index
    %c0_27 = arith.constant 0 : index
    %c0_28 = arith.constant 0 : index
    %78 = vector.load %arg3[%c0_26, %c0_27, %c0_28] : memref<1x2x4xf32, #tpu.memory_space<vmem>>, vector<1x2x4xf32>
    %79 = vector.shape_cast %78 : vector<1x2x4xf32> to vector<2x4xf32>
    %80 = vector.extract_strided_slice %79 {offsets = [0, 0], sizes = [1, 4], strides = [1, 1]} : vector<2x4xf32> to vector<1x4xf32>
    %cst_29 = arith.constant 3.906250e-03 : f32
    %81 = vector.broadcast %cst_29 : f32 to vector<1x4xf32>
    %82 = arith.mulf %80, %81 : vector<1x4xf32>
    %83 = vector.extract_strided_slice %79 {offsets = [1, 0], sizes = [1, 4], strides = [1, 1]} : vector<2x4xf32> to vector<1x4xf32>
    %cst_30 = arith.constant 3.906250e-03 : f32
    %84 = vector.broadcast %cst_30 : f32 to vector<1x4xf32>
    %85 = arith.mulf %83, %84 : vector<1x4xf32>
    %86 = arith.mulf %82, %82 : vector<1x4xf32>
    %87 = arith.subf %85, %86 : vector<1x4xf32>
    %cst_31 = arith.constant 9.99999974E-6 : f32
    %88 = vector.broadcast %cst_31 : f32 to vector<1x4xf32>
    %89 = arith.addf %87, %88 : vector<1x4xf32>
    %90 = math.rsqrt %89 : vector<1x4xf32>
    %91 = vector.shape_cast %77 : vector<64x4xf32> to vector<4x16x4xf32>
    %92 = vector.shape_cast %82 : vector<1x4xf32> to vector<1x1x4xf32>
    %93 = vector.broadcast %92 : vector<1x1x4xf32> to vector<4x16x4xf32>
    %94 = arith.subf %91, %93 : vector<4x16x4xf32>
    %95 = vector.shape_cast %90 : vector<1x4xf32> to vector<1x1x4xf32>
    %96 = vector.broadcast %95 : vector<1x1x4xf32> to vector<4x16x4xf32>
    %97 = arith.mulf %94, %96 : vector<4x16x4xf32>
    %c0_32 = arith.constant 0 : index
    %c0_33 = arith.constant 0 : index
    %c0_34 = arith.constant 0 : index
    %c0_35 = arith.constant 0 : index
    %98 = vector.load %arg8[%c0_32, %c0_33, %c0_34, %c0_35] : memref<1x4x16x4xf32, #tpu.memory_space<vmem>>, vector<1x4x16x4xf32>
    %99 = vector.shape_cast %98 : vector<1x4x16x4xf32> to vector<4x16x4xf32>
    %100 = arith.addf %99, %97 : vector<4x16x4xf32>
    %c0_36 = arith.constant 0 : index
    %c0_37 = arith.constant 0 : index
    %c0_38 = arith.constant 0 : index
    %c0_39 = arith.constant 0 : index
    %101 = vector.load %arg9[%c0_36, %c0_37, %c0_38, %c0_39] : memref<1x4x16x4xf32, #tpu.memory_space<vmem>>, vector<1x4x16x4xf32>
    %102 = vector.shape_cast %101 : vector<1x4x16x4xf32> to vector<4x16x4xf32>
    %103 = vector.shape_cast %100 : vector<4x16x4xf32> to vector<1x4x16x4xf32>
    tpu.vector_store %arg9[%c0_36, %c0_37, %c0_38, %c0_39], %103 {strides = array<i32>} : memref<1x4x16x4xf32, #tpu.memory_space<vmem>>, vector<1x4x16x4xf32>,
    return
  }
  func.func @transform_0(%arg0: i32, %arg1: i32) -> (i32, i32, i32) {
    %c0_i32 = arith.constant 0 : i32
    %c0_i32_0 = arith.constant 0 : i32
    %c0_i32_1 = arith.constant 0 : i32
    return %arg0, %c0_i32, %c0_i32_0 : i32, i32, i32
  }
  func.func @transform_1(%arg0: i32, %arg1: i32) -> (i32, i32, i32) {
    %c0_i32 = arith.constant 0 : i32
    %c0_i32_0 = arith.constant 0 : i32
    %c0_i32_1 = arith.constant 0 : i32
    return %arg0, %c0_i32, %c0_i32_0 : i32, i32, i32
  }
  func.func @transform_2(%arg0: i32, %arg1: i32) -> (i32, i32, i32, i32) {
    %c4_i32 = arith.constant 4 : i32
    %0 = arith.muli %arg1, %c4_i32 : i32
    %c1_i32 = arith.constant 1 : i32
    %1 = arith.subi %0, %c1_i32 : i32
    %c0_i32 = arith.constant 0 : i32
    %2 = arith.maxsi %1, %c0_i32 : i32
    %c0_i32_0 = arith.constant 0 : i32
    %c0_i32_1 = arith.constant 0 : i32
    %c0_i32_2 = arith.constant 0 : i32
    return %arg0, %2, %c0_i32_0, %c0_i32_1 : i32, i32, i32, i32
  }
  func.func @transform_3(%arg0: i32, %arg1: i32) -> (i32, i32, i32, i32) {
    %c0_i32 = arith.constant 0 : i32
    %c0_i32_0 = arith.constant 0 : i32
    %c0_i32_1 = arith.constant 0 : i32
    return %arg0, %arg1, %c0_i32, %c0_i32_0 : i32, i32, i32, i32
  }
  func.func @transform_4(%arg0: i32, %arg1: i32) -> (i32, i32, i32, i32) {
    %c4_i32 = arith.constant 4 : i32
    %0 = arith.muli %arg1, %c4_i32 : i32
    %c4_i32_0 = arith.constant 4 : i32
    %1 = arith.addi %0, %c4_i32_0 : i32
    %c15_i32 = arith.constant 15 : i32
    %2 = arith.minsi %1, %c15_i32 : i32
    %c0_i32 = arith.constant 0 : i32
    %c0_i32_1 = arith.constant 0 : i32
    %c0_i32_2 = arith.constant 0 : i32
    return %arg0, %2, %c0_i32, %c0_i32_1 : i32, i32, i32, i32
  }
  func.func @transform_5(%arg0: i32, %arg1: i32) -> (i32, i32, i32) {
    %c0_i32 = arith.constant 0 : i32
    %c0_i32_0 = arith.constant 0 : i32
    %c0_i32_1 = arith.constant 0 : i32
    %c0_i32_2 = arith.constant 0 : i32
    return %c0_i32, %c0_i32_0, %c0_i32_1 : i32, i32, i32
  }
  func.func @transform_6(%arg0: i32, %arg1: i32) -> (i32, i32, i32, i32) {
    %c0_i32 = arith.constant 0 : i32
    %c0_i32_0 = arith.constant 0 : i32
    %c0_i32_1 = arith.constant 0 : i32
    return %arg0, %arg1, %c0_i32, %c0_i32_0 : i32, i32, i32, i32
  }
  func.func @transform_7(%arg0: i32, %arg1: i32) -> (i32, i32, i32, i32) {
    %c0_i32 = arith.constant 0 : i32
    %c0_i32_0 = arith.constant 0 : i32
    %c0_i32_1 = arith.constant 0 : i32
    return %arg0, %arg1, %c0_i32, %c0_i32_0 : i32, i32, i32, i32
  }
}

</mosaic_0001>

<bundles_post_ra>
// kernel: residual_block.4
= control target key start
LH: loop header
LB: loop body
LE: loop exit
PB: predicated region body
PF: predicated region fallthrough
CT: control target
= control target key end

     0   :  { %s1218_s18 = smov 0   ;;  %s1220_s19 = smov 0   ;;  %s1529_s0 = inlined_call_operand.vmem [shape: f32[2,2,4], index: 0, kind: input, shape index: {}]   ;;  %s1530_s1 = inlined_call_operand.vmem [shape: bf16[2,16,16,4], index: 1, kind: input, shape index: {}, may-alias: {1,2,3}]   ;;  %s1531_s2 = inlined_call_operand.vmem [shape: bf16[2,16,16,4], index: 2, kind: input, shape index: {}, may-alias: {1,2,3}]   ;;  %s1532_s3 = inlined_call_operand.vmem [shape: bf16[2,16,16,4], index: 3, kind: input, shape index: {}, may-alias: {1,2,3}]   ;;  %s1533_s4 = inlined_call_operand.vmem [shape: bf16[3,12,4], index: 4, kind: input, shape index: {}]   ;;  %s1534_s5 = inlined_call_operand.vmem [shape: f32[2,2,4], index: 5, kind: output, shape index: {}]  }
   0x1   :  { %s1222_s20 = smov 0   ;;  %s1224_s21 = smov 0  }
   0x2   :  { %s1226_s22 = smov 0  }
   0x3 LB: > { %s24_s23 = sadd.s32 1, %s1175_s20  ;;  %s27_s24 = sadd.s32 1, %s1179_s21  ;;  %s1183_s22 = sphi %s1226_s22, %s15_s22   ;;  %s1179_s21 = sphi %s1224_s21, %s1543_s21   ;;  %s1175_s20 = sphi %s1222_s20, %s1542_s20   ;;  %s1171_s19 = sphi %s1220_s19, %s1541_s19   ;;  %s1167_s18 = sphi %s1218_s18, %s1540_s18  }
   0x4   : > { %p25_p0 = scmp.ge.s32.totalorder %s24_s23, 4  ;;  %p1014_p1 = scmp.ge.s32.totalorder %s1183_s22, 1 }
   0x5   : > { %p280_p2 = scmp.lt.s32.totalorder %s1183_s22, 9 }
   0x6   : > { %s1545_s23 = smov (%p25_p0, %s24_s23), 0  ;;  %s1547_s24 = smov (!%p25_p0, %s27_s24), %s1179_s21 }
   0x7   : > { %p281_p3 = pnand %p1014_p1, %p280_p2  ;;  %p29_p4 = scmp.ge.s32.totalorder %s1547_s24, 2 }
   0x8   : > { %p342_p5 = scmp.lt.s32.totalorder (!%p281_p3), %s1171_s19, 1  ;;  %s1251_s25 = sshll.u32 (!%p281_p3), %s1167_s18, 2 }
   0x9   : > { %s1549_s24 = smov (%p29_p4, %s1547_s24), 0  ;;  %284 = sbr.rel (%p281_p3) target bundleno = 393 (0x189), region = 40 }
   0xa   : > { %p366_p6 = scmp.lt.s32.totalorder (!%p281_p3), %s1251_s25, 15  ;;  %s1017_s30 = sadd.s32 (!%p281_p3), 4294967295, %s1251_s25 }
   0xb   : > { %p348_p7 = scmp.gt.s32.totalorder (!%p281_p3), %s1017_s30, 0  ;;  %p1018_p8 = scmp.lt.s32.totalorder (!%p281_p3), %s1017_s30, 15 }
   0xc   : > { %s375_s14 = sadd.s32 (!%p281_p3), 4, %s1251_s25  ;;  %p414_p10 = scmp.gt.s32.totalorder (!%p281_p3), %s1167_s18, 0 }
   0xd   : > { %p1269_p9 = scmp.lt.s32.totalorder (!%p281_p3), %s375_s14, 15  ;;  %p417_p11 = scmp.lt.s32.totalorder (!%p281_p3), %s1167_s18, 3 }
   0xe   : > { %s1551_s19 = smov (!%p342_p5, %s1171_s19), 1  ;;  %s1553_s30 = smov (!%p348_p7, %s1017_s30), 0  ;;  %vm605_vm3 = vcmask 1047552   ;;  %vm606_vm4 = vsmask.f32 7424  ;;  %vm696_vm6 = vcmask 1045504  }
   0xf   : > { %s1015_s26 = sshll.u32 %s1551_s19, 1  ;;  %s1264_s10 = sshll.u32 %s1551_s19, 5  ;;  %vm1352_vm5 = vmand %vm605_vm3, %vm606_vm4  ;;  %vm578_vm7 = vcmask 1040384   ;;  %vm579_vm8 = vsmask.f32 256  ;;  %vm644_vm10 = vcmask 31744  }
  0x10   : > { %s345_s29 = scalar_lea.vmem %s1529_s0, %s1015_s26  ;;  %s1261_s8 = scalar_lea.vmem %s1534_s5, %s1015_s26  ;;  %vm1433_vm9 = vmand %vm578_vm7, %vm579_vm8  ;;  %vm663_vm11 = vcmask 64512   ;;  %vm687_vm12 = vcmask 97280  }
  0x11   : > { %v396_v0 = vld [vmem:[%s345_s29] sm:$0x3]  ;;  %s367_s9 = scalar_select %p366_p6, %s1251_s25, 15 }
  0x12   : > { %v397_v1 = vmul.f32 0.00390625, %v396_v0  ;;  %s1555_s30 = smov (!%p1018_p8, %s1553_s30), 15  ;;  %s1557_s14 = smov (!%p1269_p9, %s375_s14), 15 }
  0x13   : > { %s1027_s11 = sshll.u32 %s367_s9, 1  ;;  %s1023_s13 = sshll.u32 %s1555_s30, 1 }
  0x14   : > { %v398_v2 = vmul.f32 %v397_v1, %v397_v1  ;;  %s370_s12 = sadd.s32 %s1027_s11, %s1264_s10  ;;  %s356_s16 = sadd.s32 %s1264_s10, %s1023_s13  ;;  %v1281_v12 = vperm.slane %v397_v1, 0 }
  0x15   : > { %s1029_s15 = sshll.u32 %s370_s12, 2  ;;  %s1025_s28 = sshll.u32 %s356_s16, 2 }
  0x16   : > { %v400_v3 = vrot.slane %v398_v2, 7  ;;  %s372_s19 = scalar_lea.vmem %s1531_s2, %s1029_s15  ;;  %s358_s30 = scalar_lea.vmem %s1530_s1, %s1025_s28 }
  0x17   : > { %v1095_v8 = vld [vmem:[%s372_s19 + $0x10] sm:$0xff]   ;;  %v1094_v10 = vld [vmem:[%s372_s19 + $0x8] sm:$0xff]   ;;  %v1079_v11 = vld [vmem:[%s372_s19] sm:$0xff]   ;;  %s1559_s14 = smov (!%p1269_p9, %s1557_s14), 15  ;;  %s1185_s15 = smov 4  }
  0x18   : > { %v402_v4 = vsub.f32 %v397_v1, %v400_v3  ;;  %v1096_v13 = vld [vmem:[%s372_s19 + $0x18] sm:$0xff]   ;;  %v1088_v15 = vunpack.c.l.bf16 %v1095_v8  ;;  %v1089_v16 = vunpack.c.h.bf16 %v1095_v8  ;;  %v1084_v17 = vunpack.c.l.bf16 %v1094_v10  ;;  %v1071_v20 = vld [vmem:[%s358_s30] sm:$0xff]   ;;  %s1034_s6 = sshll.u32 %s1559_s14, 1  ;;  %s1186_s26 = smov 8  }
  0x19   : > { %v1085_v18 = vunpack.c.h.bf16 %v1094_v10  ;;  %v1080_v19 = vunpack.c.l.bf16 %v1079_v11  ;;  %v1081_v22 = vunpack.c.h.bf16 %v1079_v11  ;;  %v1092_v23 = vunpack.c.l.bf16 %v1096_v13  ;;  %s384_s7 = sadd.s32 %s1034_s6, %s1264_s10  ;;  %p1062_p12 = scmp.ne.s32.totalorder %s1167_s18, 0 }
  0x1a   : > { %v403_v5 = vadd.f32 1e-05, %v402_v4  ;;  %v1093_v24 = vunpack.c.h.bf16 %v1096_v13  ;;  %v468_v26 = vsub.f32 %v1088_v15, %v1281_v12  ;;  %v1072_v27 = vunpack.c.l.bf16 %v1071_v20  ;;  %s1302_s9 = sshll.u32 %s384_s7, 2 }
  0x1b   : > { %v1073_v28 = vunpack.c.h.bf16 %v1071_v20  ;;  %v469_v29 = vsub.f32 %v1089_v16, %v1281_v12  ;;  %v466_v30 = vsub.f32 %v1084_v17, %v1281_v12  ;;  %v467_v31 = vsub.f32 %v1085_v18, %v1281_v12  ;;  %s386_s12 = scalar_lea.vmem %s1532_s3, %s1302_s9 }
  0x1c   : > { %1143 = vrsqrt.f32 %v403_v5  ;;  %vm410_vm0 = vweird.f32 %v403_v5  ;;  %v464_v32 = vsub.f32 %v1080_v19, %v1281_v12  ;;  %v465_v34 = vsub.f32 %v1081_v22, %v1281_v12  ;;  %s1315_s13 = scalar_select %p414_p10, 1, 0  ;;  %v1075_v4 = vld [vmem:[%s386_s12] sm:$0xff]  }
  0x1d   : > { %v470_v35 = vsub.f32 %v1092_v23, %v1281_v12  ;;  %v471_v36 = vsub.f32 %v1093_v24, %v1281_v12  ;;  %v425_v38 = vsub.f32 %v1072_v27, %v1281_v12  ;;  %v426_v39 = vsub.f32 %v1073_v28, %v1281_v12  ;;  %s1339_s16 = scalar_select %p417_p11, 1, 0  ;;  %v1056_v27 = vld [vmem:[%s1533_s4 + $0x10] sm:$0xf] }
  0x1e   : > { %s416_s14 = scvt.s32.f32 %s1315_s13  ;;  %v1076_v16 = vunpack.c.l.bf16 %v1075_v4  ;;  %v1077_v24 = vunpack.c.h.bf16 %v1075_v4 }
  0x1f   : > { %s419_s17 = scvt.s32.f32 %s1339_s16 }
  0x22   : > { %v1144_v6 = vpop.eup %1143 }
  0x23   : > { %v405_v7 = vmul.f32 %v1144_v6, %v403_v5  ;;  %vm411_vm1 = vweird.f32 %v1144_v6 }
  0x24   : > { %vm412_vm2 = vmor %vm410_vm0, %vm411_vm1 }
  0x25   : > { %v406_v9 = vmul.f32 %v1144_v6, %v405_v7 }
  0x27   : > { %v407_v14 = vmul.f32 0.5, %v406_v9 }
  0x29   : > { %v408_v21 = vsub.f32 1.5, %v407_v14 }
  0x2b   : > { %v409_v25 = vmul.f32 %v1144_v6, %v408_v21 }
  0x2d   : > { %v413_v33 = vsel %vm412_vm2, %v1144_v6, %v409_v25 }
  0x2e   : > { %v1294_v37 = vperm.slane %v413_v33, 1 }
  0x30   : > { %v476_v40 = vmul.f32 %v468_v26, %v1294_v37  ;;  %v477_v41 = vmul.f32 %v469_v29, %v1294_v37  ;;  %v474_v42 = vmul.f32 %v466_v30, %v1294_v37  ;;  %v475_v43 = vmul.f32 %v467_v31, %v1294_v37 }
  0x31   : > { %v472_v44 = vmul.f32 %v464_v32, %v1294_v37  ;;  %v473_v45 = vmul.f32 %v465_v34, %v1294_v37  ;;  %v478_v46 = vmul.f32 %v470_v35, %v1294_v37  ;;  %v479_v47 = vmul.f32 %v471_v36, %v1294_v37 }
  0x32   : > { %v484_v48 = vmax.f32 %v476_v40, 0.0  ;;  %v485_v49 = vmax.f32 %v477_v41, 0.0  ;;  %v482_v50 = vmax.f32 %v474_v42, 0.0  ;;  %v483_v51 = vmax.f32 %v475_v43, 0.0 }
  0x33   : > { %v480_v52 = vmax.f32 %v472_v44, 0.0  ;;  %v481_v53 = vmax.f32 %v473_v45, 0.0  ;;  %v486_v54 = vmax.f32 %v478_v46, 0.0  ;;  %v487_v55 = vmax.f32 %v479_v47, 0.0 }
  0x34   : > { %v494_v56 = vpack.c.bf16 %v484_v48, %v484_v48  ;;  %v495_v57 = vpack.c.bf16 %v485_v49, %v485_v49  ;;  %v492_v58 = vpack.c.bf16 %v482_v50, %v482_v50  ;;  %v493_v59 = vpack.c.bf16 %v483_v51, %v483_v51 }
  0x35   : > { %v490_v60 = vpack.c.bf16 %v480_v52, %v480_v52  ;;  %v491_v61 = vpack.c.bf16 %v481_v53, %v481_v53  ;;  %v496_v62 = vpack.c.bf16 %v486_v54, %v486_v54  ;;  %v497_v63 = vpack.c.bf16 %v487_v55, %v487_v55 }
  0x36   : > { %v518_v0 = vunpack.c.l.b16 %v494_v56  ;;  %v519_v1 = vunpack.c.l.b16 %v495_v57  ;;  %v516_v2 = vunpack.c.l.b16 %v492_v58  ;;  %v517_v3 = vunpack.c.l.b16 %v493_v59 }
  0x37   : > { %v514_v5 = vunpack.c.l.b16 %v490_v60  ;;  %v515_v6 = vunpack.c.l.b16 %v491_v61  ;;  %v520_v7 = vunpack.c.l.b16 %v496_v62  ;;  %v521_v8 = vunpack.c.l.b16 %v497_v63 }
  0x38   : > { %v1318_v9 = vpack.c.b16 %v519_v1, %v518_v0  ;;  %v1320_v10 = vpack.c.b16 %v517_v3, %v516_v2  ;;  %v428_v11 = vmul.f32 %v1294_v37, %v425_v38  ;;  %v429_v15 = vmul.f32 %v1294_v37, %v426_v39 }
  0x39   : > { %v1323_v13 = vpack.c.b16 %v515_v6, %v514_v5  ;;  %v1325_v14 = vpack.c.b16 %v521_v8, %v520_v7  ;;  %v432_v30 = vstv %s416_s14  ;;  %v439_v38 = vsub.f32 %v1076_v16, %v1281_v12  ;;  %v1067_v16 = vld [vmem:[%s1533_s4] sm:$0x30] }
  0x3a   : > { %620 = vrot.lane.b32.xlu1 %v1318_v9, %s1185_s15  ;;  %618 = vrot.lane.b32.xlu0 %v1320_v10, %s1185_s15  ;;  %v552_v17 = vshrl.u32 %v1318_v9, 16  ;;  %v555_v18 = vshll.u32 %v1318_v9, 16  ;;  %v545_v19 = vshrl.u32 %v1320_v10, 16  ;;  %v548_v20 = vshll.u32 %v1320_v10, 16 }
  0x3b   : > { %616 = vrot.lane.b32.xlu2 %v1323_v13, %s1185_s15  ;;  %v538_v21 = vshrl.u32 %v1323_v13, 16  ;;  %v541_v22 = vshll.u32 %v1323_v13, 16  ;;  %v562_v23 = vshll.u32 %v1325_v14, 16  ;;  %v559_v29 = vshrl.u32 %v1325_v14, 16  ;;  %v1068_v13 = vld [vmem:[%s1533_s4 + $0x8] sm:$0x30] }
  0x3c   : > { %v593_v25 = vrot.slane %v555_v18, 1  ;;  %v591_v26 = vrot.slane %v548_v20, 1  ;;  %v430_v33 = vmax.f32 %v428_v11, 0.0  ;;  %v431_v34 = vmax.f32 %v429_v15, 0.0  ;;  %v1048_v15 = vld [vmem:[%s1533_s4] sm:$0xf] }
  0x3d   : > { %v589_v28 = vrot.slane %v541_v22, 1  ;;  %v595_v36 = vrot.slane %v562_v23, 1  ;;  %v440_v39 = vsub.f32 %v1077_v24, %v1281_v12  ;;  %v441_v45 = vmul.f32 %v439_v38, %v1294_v37 }
  0x3e   : > { %v594_v31 = vor.u32 %v593_v25, %v552_v17  ;;  %v592_v32 = vor.u32 %v591_v26, %v545_v19  ;;  %v433_v42 = vmul.f32 %v432_v30, %v430_v33  ;;  %v434_v43 = vmul.f32 %v432_v30, %v431_v34  ;;  %v1040_v26 = vld [vmem:[%s1533_s4 + $0x8] sm:$0xf] }
  0x3f   : > { %v590_v35 = vor.u32 %v589_v28, %v538_v21  ;;  %v442_v46 = vmul.f32 %v440_v39, %v1294_v37  ;;  %v445_v48 = vstv %s419_s17  ;;  %v596_v49 = vor.u32 %v595_v36, %v559_v29  ;;  %v1069_v28 = vld [vmem:[%s1533_s4 + $0x10] sm:$0x30] }
  0x40   : > { %v611_v40 = vsel %vm1352_vm5, %v594_v31, 0  ;;  %v610_v41 = vsel %vm1352_vm5, %v592_v32, 0  ;;  %v488_v12 = vpack.c.bf16 %v433_v42, %v433_v42  ;;  %v489_v47 = vpack.c.bf16 %v434_v43, %v434_v43 }
  0x41   : > { %v609_v44 = vsel %vm1352_vm5, %v590_v35, 0  ;;  %v443_v50 = vmax.f32 %v441_v45, 0.0  ;;  %v444_v51 = vmax.f32 %v442_v46, 0.0  ;;  %v612_v56 = vsel %vm1352_vm5, %v596_v49, 0 }
  0x42   : > { %638 = vrot.lane.b32.xlu1 %v611_v40, %s1186_s26  ;;  %636 = vrot.lane.b32.xlu0 %v610_v41, %s1186_s26  ;;  %v512_v52 = vunpack.c.l.b16 %v488_v12  ;;  %v513_v53 = vunpack.c.l.b16 %v489_v47  ;;  %v540_v8 = vrot.slane %v538_v21, 7  ;;  %v1049_v24 = vor.u32 %v1067_v16, %v1048_v15 }
  0x43   : > { %634 = vrot.lane.b32.xlu2 %v609_v44, %s1186_s26  ;;  %v446_v54 = vmul.f32 %v445_v48, %v443_v50  ;;  %v447_v55 = vmul.f32 %v445_v48, %v444_v51  ;;  %v1041_v21 = vor.u32 %v1068_v13, %v1040_v26  ;;  %v1057_v30 = vor.u32 %v1069_v28, %v1056_v27 }
  0x44   : > { %v1381_v37 = vpack.c.b16 %v513_v53, %v512_v52  ;;  %v543_v11 = vor.u32 %v541_v22, %v540_v8  ;;  %v737_v25 = vsel %vm696_vm6, %v1049_v24, 0  ;;  %v554_v39 = vrot.slane %v552_v17, 7 }
  0x45   : > { %v498_v57 = vpack.c.bf16 %v446_v54, %v446_v54  ;;  %v499_v58 = vpack.c.bf16 %v447_v55, %v447_v55  ;;  %1098 = vmatpush.bf16.msra.mxu1 %v737_v25  ;;  %v698_v22 = vsel %vm696_vm6, %v1041_v21, 0  ;;  %v776_v31 = vsel %vm696_vm6, %v1057_v30, 0 }
  0x46   : > { %v531_v59 = vshrl.u32 %v1381_v37, 16  ;;  %v534_v60 = vshll.u32 %v1381_v37, 16  ;;  %707 = vmatpush.bf16.msra.mxu0 %v698_v22  ;;  %1097 = vmatpush.bf16.msra.mxu3 %v698_v22  ;;  %v582_v34 = vsel %vm1433_vm9, 0, %v543_v11  ;;  %v547_v40 = vrot.slane %v545_v19, 7 }
  0x47   : > { %v522_v61 = vunpack.c.l.b16 %v498_v57  ;;  %v523_v62 = vunpack.c.l.b16 %v499_v58  ;;  %1099 = vmatpush.bf16.msra.mxu2 %v776_v31  ;;  %v557_v43 = vor.u32 %v555_v18, %v554_v39  ;;  %v561_v10 = vrot.slane %v559_v29, 7 }
  0x48   : > { %v587_v63 = vrot.slane %v534_v60, 1  ;;  %v550_v44 = vor.u32 %v548_v20, %v547_v40  ;;  %v533_v18 = vrot.slane %v531_v59, 7 }
  0x49   : > { %v1392_v0 = vpack.c.b16 %v523_v62, %v522_v61  ;;  %v584_v45 = vsel %vm1433_vm9, 0, %v557_v43  ;;  %v564_v20 = vor.u32 %v562_v23, %v561_v10 }
  0x4a   : > { %622 = vrot.lane.b32.xlu0 %v1325_v14, %s1185_s15  ;;  %640 = vrot.lane.b32.xlu1 %v612_v56, %s1186_s26  ;;  %v588_v1 = vor.u32 %v587_v63, %v531_v59  ;;  %v583_v46 = vsel %vm1433_vm9, 0, %v550_v44  ;;  %v536_v49 = vor.u32 %v534_v60, %v533_v18 }
  0x4b   : > { %614 = vrot.lane.b32.xlu2 %v1381_v37, %s1185_s15  ;;  %v566_v2 = vshrl.u32 %v1392_v0, 16  ;;  %v569_v3 = vshll.u32 %v1392_v0, 16  ;;  %746 = vmatpush.bf16.msrb.mxu0 %v737_v25  ;;  %v585_v51 = vsel %vm1433_vm9, 0, %v564_v20 }
  0x4c   : > { %v608_v4 = vsel %vm1352_vm5, %v588_v1, 0  ;;  %v581_v52 = vsel %vm1433_vm9, 0, %v536_v49 }
  0x4d   : > { %v597_v5 = vrot.slane %v569_v3, 1  ;;  %v568_v37 = vrot.slane %v566_v2, 7 }
  0x4f   : > { %v598_v6 = vor.u32 %v597_v5, %v566_v2  ;;  %v571_v57 = vor.u32 %v569_v3, %v568_v37 }
  0x51   : > { %v613_v7 = vsel %vm1352_vm5, %v598_v6, 0  ;;  %v586_v59 = vsel %vm1433_vm9, 0, %v571_v57 }
  0x52   : > { %632 = vrot.lane.b32.xlu0 %v608_v4, %s1186_s26  ;;  %624 = vrot.lane.b32.xlu1 %v1392_v0, %s1185_s15 }
  0x53   : > { %642 = vrot.lane.b32.xlu2 %v613_v7, %s1186_s26 }
  0x95   : > { %v617_v33 = vpop.permute.xlu2 %616 }
  0x96   : > { %v650_v35 = vsel %vm644_vm10, %v582_v34, %v617_v33 }
  0x9d   : > { %v635_v36 = vpop.permute.xlu2 %634 }
  0x9e   : > { %v667_v38 = vsel %vm663_vm11, %v650_v35, %v635_v36 }
  0x9f   : > { %1051 = vmatmul.msk.bf16.vlgmr.msra.gmra.mxu1 %vm687_vm12, %v667_v38  ;;  %1042 = vmatmul.msk.bf16.vlgmr.msra.gmra.mxu0 %vm687_vm12, %v667_v38 }
  0xa0   : > { %785 = vmatpush.bf16.msra.mxu0 %v776_v31 }
  0xa5   : > { %v615_v29 = vpop.permute.xlu2 %614 }
  0xa6   : > { %v647_v55 = vsel %vm644_vm10, %v581_v52, %v615_v29 }
  0xac   : > { %v621_v41 = vpop.permute.xlu1 %620  ;;  %v619_v42 = vpop.permute.xlu0 %618 }
  0xad   : > { %v656_v12 = vsel %vm644_vm10, %v584_v45, %v621_v41  ;;  %v653_v17 = vsel %vm644_vm10, %v583_v46, %v619_v42  ;;  %v643_v61 = vpop.permute.xlu2 %642 }
  0xb4   : > { %v639_v47 = vpop.permute.xlu1 %638  ;;  %v637_v19 = vpop.permute.xlu0 %636 }
  0xb5   : > { %v669_v48 = vsel %vm663_vm11, %v653_v17, %v637_v19  ;;  %v671_v9 = vsel %vm663_vm11, %v656_v12, %v639_v47 }
  0xb6   : > { %1043 = vmatmul.msk.bf16.vlgmr.msra.gmra.mxu3 %vm687_vm12, %v669_v48  ;;  %1052 = vmatmul.msk.bf16.gmra.mxu1 %vm687_vm12, %v669_v48 }
  0xb7   : > { %1059 = vmatmul.msk.bf16.vlgmr.msra.gmra.mxu2 %vm687_vm12, %v671_v9 }
  0xbc   : > { %v623_v50 = vpop.permute.xlu0 %622  ;;  %v641_v54 = vpop.permute.xlu1 %640 }
  0xbd   : > { %v659_v53 = vsel %vm644_vm10, %v585_v51, %v623_v50 }
  0xbe   : > { %v673_v14 = vsel %vm663_vm11, %v659_v53, %v641_v54 }
  0xc4   : > { %v633_v56 = vpop.permute.xlu0 %632  ;;  %v625_v58 = vpop.permute.xlu1 %624 }
  0xc5   : > { %v665_v23 = vsel %vm663_vm11, %v647_v55, %v633_v56  ;;  %v662_v60 = vsel %vm644_vm10, %v586_v59, %v625_v58 }
  0xc6   : > { %1044 = vmatmul.msk.bf16.gmra.mxu3 %vm687_vm12, %v671_v9  ;;  %1050 = vmatmul.msk.bf16.vlgmr.msrb.gmra.mxu0 %vm687_vm12, %v665_v23  ;;  %v675_v62 = vsel %vm663_vm11, %v662_v60, %v643_v61 }
  0xc7   : > { %1053 = vmatmul.msk.bf16.gmra.mxu1 %vm687_vm12, %v671_v9  ;;  %1060 = vmatmul.msk.bf16.gmra.mxu2 %vm687_vm12, %v673_v14 }
  0xd6   : > { %1045 = vmatmul.msk.bf16.gmra.mxu3 %vm687_vm12, %v673_v14  ;;  %1058 = vmatmul.msk.bf16.vlgmr.msra.gmra.mxu0 %vm687_vm12, %v669_v48 }
  0xd7   : > { %1061 = vmatmul.msk.bf16.gmra.mxu2 %vm687_vm12, %v675_v62 }
 0x11c   : > { %v753_v63 = vpop.f32.mrf.mxu1  ;;  %v709_v1 = vpop.f32.mrf.mxu0 }
 0x124   : > { %v755_v2 = vpop.f32.mrf.mxu1  ;;  %v711_v5 = vpop.f32.mrf.mxu0 }
 0x133   : > { %v758_v15 = vpop.f32.mrf.mxu1 }
 0x139   : > { %v714_v0 = vpop.f32.mrf.mxu3 }
 0x13a   : > { %v754_v3 = vadd.f32 %v753_v63, %v714_v0  ;;  %v792_v4 = vpop.f32.mrf.mxu2 }
 0x13b   : > { %v760_v27 = vpop.f32.mrf.mxu1 }
 0x13c   : > { %v809_v6 = vadd.f32 %v792_v4, %v754_v3 }
 0x141   : > { %v716_v7 = vpop.f32.mrf.mxu3 }
 0x142   : > { %v756_v8 = vadd.f32 %v755_v2, %v716_v7  ;;  %v794_v11 = vpop.f32.mrf.mxu2 }
 0x143   : > { %v748_v16 = vpop.f32.mrf.mxu0 }
 0x144   : > { %v810_v24 = vadd.f32 %v794_v11, %v756_v8  ;;  %v749_v30 = vadd.f32 %v748_v16, %v709_v1  ;;  %v763_v36 = vpop.f32.mrf.mxu1 }
 0x149   : > { %v719_v25 = vpop.f32.mrf.mxu3 }
 0x14a   : > { %v759_v26 = vadd.f32 %v758_v15, %v719_v25  ;;  %v797_v13 = vpop.f32.mrf.mxu2 }
 0x14b   : > { %v750_v21 = vpop.f32.mrf.mxu0 }
 0x14c   : > { %v811_v22 = vadd.f32 %v797_v13, %v759_v26  ;;  %v751_v39 = vadd.f32 %v750_v21, %v711_v5  ;;  %v765_v45 = vpop.f32.mrf.mxu1 }
 0x151   : > { %v721_v28 = vpop.f32.mrf.mxu3 }
 0x152   : > { %v761_v31 = vadd.f32 %v760_v27, %v721_v28  ;;  %v799_v32 = vpop.f32.mrf.mxu2 }
 0x153   : > { %v787_v33 = vpop.f32.mrf.mxu0 }
 0x154   : > { %v812_v34 = vadd.f32 %v799_v32, %v761_v31  ;;  %v807_v35 = vadd.f32 %v787_v33, %v749_v30 }
 0x159   : > { %v724_v38 = vpop.f32.mrf.mxu3 }
 0x15a   : > { %v764_v40 = vadd.f32 %v763_v36, %v724_v38  ;;  %v802_v41 = vpop.f32.mrf.mxu2 }
 0x15b   : > { %v789_v42 = vpop.f32.mrf.mxu0 }
 0x15c   : > { %v813_v43 = vadd.f32 %v802_v41, %v764_v40  ;;  %v808_v44 = vadd.f32 %v789_v42, %v751_v39 }
 0x160   : > { %818 = sbr.rel (%p1062_p12) target bundleno = 359 (0x167), region = 44 }
 0x161   : > { %v726_v46 = vpop.f32.mrf.mxu3 }
 0x162   : > { %v766_v12 = vadd.f32 %v765_v45, %v726_v46  ;;  %v804_v17 = vpop.f32.mrf.mxu2 }
 0x164   : > { %v814_v47 = vadd.f32 %v804_v17, %v766_v12 }
 0x165   : > { %vm819_vm13 = vcmask 25600   ;;  %v1187_v19 = vmov 0.0  }
 0x166   : > { %820 = vst.msk [vmem:[%s1261_s8] sm:$0x3] %vm819_vm13, %v1187_v19 }
 0x167 PF: > { %v821_v48 = vsel %vm644_vm10, %v807_v35, 0.0  ;;  %v822_v9 = vsel %vm644_vm10, %v808_v44, 0.0  ;;  %v824_v10 = vsel %vm644_vm10, %v809_v6, 0.0  ;;  %v826_v20 = vsel %vm644_vm10, %v810_v24, 0.0 }
 0x168   : > { %v823_v18 = vadd.f32 %v822_v9, %v821_v48  ;;  %v842_v49 = vmul.f32 %v807_v35, %v807_v35  ;;  %v843_v50 = vmul.f32 %v808_v44, %v808_v44  ;;  %v844_v51 = vmul.f32 %v809_v6, %v809_v6 }
 0x169   : > { %v845_v52 = vmul.f32 %v810_v24, %v810_v24  ;;  %v828_v53 = vsel %vm644_vm10, %v811_v22, 0.0  ;;  %v846_v54 = vmul.f32 %v811_v22, %v811_v22  ;;  %v830_v57 = vsel %vm644_vm10, %v812_v34, 0.0 }
 0x16a   : > { %v825_v29 = vadd.f32 %v824_v10, %v823_v18  ;;  %v850_v55 = vsel %vm644_vm10, %v842_v49, 0.0  ;;  %v851_v56 = vsel %vm644_vm10, %v843_v50, 0.0  ;;  %v853_v37 = vsel %vm644_vm10, %v844_v51, 0.0 }
 0x16b   : > { %v852_v23 = vadd.f32 %v851_v56, %v850_v55  ;;  %v847_v58 = vmul.f32 %v812_v34, %v812_v34  ;;  %v855_v59 = vsel %vm644_vm10, %v845_v52, 0.0  ;;  %v832_v62 = vsel %vm644_vm10, %v813_v43, 0.0 }
 0x16c   : > { %v827_v14 = vadd.f32 %v826_v20, %v825_v29  ;;  %v848_v63 = vmul.f32 %v813_v43, %v813_v43  ;;  %v857_v1 = vsel %vm644_vm10, %v846_v54, 0.0  ;;  %v834_v3 = vsel %vm644_vm10, %v814_v47, 0.0 }
 0x16d   : > { %v854_v61 = vadd.f32 %v853_v37, %v852_v23  ;;  %v849_v4 = vmul.f32 %v814_v47, %v814_v47  ;;  %v859_v5 = vsel %vm644_vm10, %v847_v58, 0.0  ;;  %v871_v36 = vld [vmem:[%s1261_s8] sm:$0x3]  ;;  %vm875_vm14 = vcmask 25600  }
 0x16e   : > { %v829_v60 = vadd.f32 %v828_v53, %v827_v14  ;;  %v861_v8 = vsel %vm644_vm10, %v848_v63, 0.0 }
 0x16f   : > { %v856_v0 = vadd.f32 %v855_v59, %v854_v61  ;;  %v863_v16 = vsel %vm644_vm10, %v849_v4, 0.0 }
 0x170   : > { %v831_v2 = vadd.f32 %v830_v57, %v829_v60 }
 0x171   : > { %v858_v7 = vadd.f32 %v857_v1, %v856_v0 }
 0x172   : > { %v833_v6 = vadd.f32 %v832_v62, %v831_v2 }
 0x173   : > { %v860_v15 = vadd.f32 %v859_v5, %v858_v7 }
 0x174   : > { %v835_v11 = vadd.f32 %v834_v3, %v833_v6 }
 0x175   : > { %v862_v25 = vadd.f32 %v861_v8, %v860_v15 }
 0x176   : > { %v836_v24 = vrot.slane %v835_v11, 4 }
 0x177   : > { %v864_v13 = vadd.f32 %v863_v16, %v862_v25 }
 0x178   : > { %v837_v26 = vadd.f32 %v836_v24, %v835_v11 }
 0x179   : > { %v865_v22 = vrot.slane %v864_v13, 4 }
 0x17a   : > { %v838_v21 = vrot.slane %v837_v26, 2 }
 0x17b   : > { %v866_v28 = vadd.f32 %v865_v22, %v864_v13 }
 0x17c   : > { %v839_v27 = vadd.f32 %v838_v21, %v837_v26 }
 0x17d   : > { %v867_v31 = vrot.slane %v866_v28, 2 }
 0x17e   : > { %v840_v30 = vrot.slane %v839_v27, 1 }
 0x17f   : > { %v868_v32 = vadd.f32 %v867_v31, %v866_v28 }
 0x180   : > { %v841_v33 = vadd.f32 %v840_v30, %v839_v27 }
 0x181   : > { %v869_v34 = vrot.slane %v868_v32, 1 }
 0x183   : > { %v870_v35 = vadd.f32 %v869_v34, %v868_v32 }
 0x185   : > { %v873_v38 = vsel %vm578_vm7, %v841_v33, %v870_v35 }
 0x186   : > { %v874_v39 = vadd.f32 %v873_v38, %v871_v36 }
 0x188   : > { %876 = vst.msk [vmem:[%s1261_s8] sm:$0x3] %vm875_vm14, %v874_v39 }
 0x189 PF: > { %s15_s22 = sadd.s32 1, %s1183_s22   ;;  %s1540_s18 = smov %s1175_s20 }
 0x18a   : > { %p12_p13 = scmp.ge.s32.totalorder %s15_s22, 10   ;;  %s1541_s19 = smov %s1179_s21 }
 0x18b   : > { %s1542_s20 = smov %s1545_s23  ;;  %s1543_s21 = smov %s1549_s24 }
 0x18c   :  { %14 = sbr.rel (!%p12_p13) target bundleno = 3 (0x3), region = 83 }

// kernel: residual_block.3
= control target key start
LH: loop header
LB: loop body
LE: loop exit
PB: predicated region body
PF: predicated region fallthrough
CT: control target
= control target key end

     0   :  { %s1195_s18 = smov 0   ;;  %s1197_s19 = smov 0   ;;  %s1500_s0 = inlined_call_operand.vmem [shape: f32[2,16,16,4], index: 0, kind: input, shape index: {}, may-alias: {0,1,2}]   ;;  %s1501_s1 = inlined_call_operand.vmem [shape: f32[2,16,16,4], index: 1, kind: input, shape index: {}, may-alias: {0,1,2}]   ;;  %s1502_s2 = inlined_call_operand.vmem [shape: f32[2,16,16,4], index: 2, kind: input, shape index: {}, may-alias: {0,1,2}]   ;;  %s1503_s3 = inlined_call_operand.vmem [shape: bf16[3,12,4], index: 3, kind: input, shape index: {}]   ;;  %s1504_s4 = inlined_call_operand.vmem [shape: bf16[2,16,16,4], index: 4, kind: output, shape index: {0}]   ;;  %s1505_s5 = inlined_call_operand.vmem [shape: f32[2,2,4], index: 5, kind: output, shape index: {1}]  }
   0x1   :  { %s1199_s20 = smov 0   ;;  %s1201_s21 = smov 0  }
   0x2   :  { %s1203_s22 = smov 0  }
   0x3 LB: > { %s25_s23 = sadd.s32 1, %s1152_s20  ;;  %s28_s24 = sadd.s32 1, %s1156_s21  ;;  %s1160_s22 = sphi %s1203_s22, %s16_s22   ;;  %s1156_s21 = sphi %s1201_s21, %s1514_s21   ;;  %s1152_s20 = sphi %s1199_s20, %s1513_s20   ;;  %s1148_s19 = sphi %s1197_s19, %s1512_s19   ;;  %s1144_s18 = sphi %s1195_s18, %s1511_s18  }
   0x4   : > { %p26_p0 = scmp.ge.s32.totalorder %s25_s23, 4  ;;  %p1017_p1 = scmp.ge.s32.totalorder %s1160_s22, 1 }
   0x5   : > { %p276_p2 = scmp.lt.s32.totalorder %s1160_s22, 9 }
   0x6   : > { %s1516_s23 = smov (%p26_p0, %s25_s23), 0  ;;  %s1518_s24 = smov (!%p26_p0, %s28_s24), %s1156_s21 }
   0x7   : > { %p277_p3 = pnand %p1017_p1, %p276_p2  ;;  %p30_p4 = scmp.ge.s32.totalorder %s1518_s24, 2 }
   0x8   : > { %s1228_s25 = sshll.u32 (!%p277_p3), %s1144_s18, 2  ;;  %p348_p5 = scmp.lt.s32.totalorder (!%p277_p3), %s1148_s19, 1 }
   0x9   : > { %s1520_s24 = smov (%p30_p4, %s1518_s24), 0  ;;  %280 = sbr.rel (%p277_p3) target bundleno = 368 (0x170), region = 36 }
   0xa   : > { %p364_p6 = scmp.lt.s32.totalorder (!%p277_p3), %s1228_s25, 15  ;;  %s1019_s10 = sadd.s32 (!%p277_p3), 4294967295, %s1228_s25 }
   0xb   : > { %p346_p7 = scmp.gt.s32.totalorder (!%p277_p3), %s1019_s10, 0  ;;  %p1020_p8 = scmp.lt.s32.totalorder (!%p277_p3), %s1019_s10, 15 }
   0xc   : > { %p405_p9 = scmp.gt.s32.totalorder (!%p277_p3), %s1144_s18, 0  ;;  %s373_s17 = sadd.s32 (!%p277_p3), 4, %s1228_s25 }
   0xd   : > { %p1255_p10 = scmp.lt.s32.totalorder (!%p277_p3), %s373_s17, 15  ;;  %p408_p11 = scmp.lt.s32.totalorder (!%p277_p3), %s1144_s18, 3 }
   0xe   : > { %s1522_s19 = smov (!%p348_p5, %s1148_s19), 1  ;;  %vm546_vm0 = vcmask 1047552   ;;  %vm547_vm1 = vsmask.f32 7424  ;;  %vm637_vm3 = vcmask 1045504   ;;  %vm519_vm4 = vcmask 1040384  }
   0xf   : > { %s365_s26 = scalar_select %p364_p6, %s1228_s25, 15  ;;  %vm1288_vm2 = vmand %vm546_vm0, %vm547_vm1  ;;  %vm520_vm5 = vsmask.f32 256  ;;  %vm585_vm7 = vcmask 31744   ;;  %vm604_vm8 = vcmask 64512   ;;  %vm628_vm9 = vcmask 97280  }
  0x10   : > { %s1232_s27 = sshll.u32 %s1522_s19, 5  ;;  %s1043_s28 = sshll.u32 %s1522_s19, 1  ;;  %vm1375_vm6 = vmand %vm519_vm4, %vm520_vm5  ;;  %vm764_vm10 = vcmask 27648  }
  0x11   : > { %s1029_s29 = sshll.u32 %s365_s26, 1  ;;  %s1237_s7 = scalar_lea.vmem %s1505_s5, %s1043_s28 }
  0x12   : > { %s1240_s8 = sadd.s32 %s1029_s29, %s1232_s27  ;;  %s1162_s29 = smov 4  }
  0x13   : > { %s1031_s9 = sshll.u32 %s1240_s8, 3  ;;  %s1526_s17 = smov (!%p1255_p10, %s373_s17), 15 }
  0x14   : > { %s370_s13 = scalar_lea.vmem %s1501_s1, %s1031_s9  ;;  %s1528_s17 = smov (!%p1255_p10, %s1526_s17), 15 }
  0x15   : > { %v420_v0 = vld [vmem:[%s370_s13 + $0x20] sm:$0xff]  ;;  %v421_v1 = vld [vmem:[%s370_s13 + $0x28] sm:$0xff]  ;;  %v418_v2 = vld [vmem:[%s370_s13 + $0x10] sm:$0xff]  ;;  %s347_s14 = scalar_select %p346_p7, %s1019_s10, 0 }
  0x16   : > { %v435_v3 = vpack.c.bf16 %v420_v0, %v420_v0  ;;  %v436_v4 = vpack.c.bf16 %v421_v1, %v421_v1  ;;  %v419_v5 = vld [vmem:[%s370_s13 + $0x18] sm:$0xff]  ;;  %v433_v6 = vpack.c.bf16 %v418_v2, %v418_v2  ;;  %v416_v7 = vld [vmem:[%s370_s13] sm:$0xff]  ;;  %v417_v8 = vld [vmem:[%s370_s13 + $0x8] sm:$0xff]  ;;  %s1248_s15 = scalar_select %p405_p9, 1, 0 }
  0x17   : > { %v434_v9 = vpack.c.bf16 %v419_v5, %v419_v5  ;;  %v431_v10 = vpack.c.bf16 %v416_v7, %v416_v7  ;;  %v432_v11 = vpack.c.bf16 %v417_v8, %v417_v8  ;;  %v422_v12 = vld [vmem:[%s370_s13 + $0x30] sm:$0xff]  ;;  %v423_v13 = vld [vmem:[%s370_s13 + $0x38] sm:$0xff]  ;;  %s1524_s14 = smov (!%p1020_p8, %s347_s14), 15  ;;  %s1036_s12 = sshll.u32 %s1528_s17, 1 }
  0x18   : > { %v459_v14 = vunpack.c.l.b16 %v435_v3  ;;  %v460_v15 = vunpack.c.l.b16 %v436_v4  ;;  %v457_v16 = vunpack.c.l.b16 %v433_v6  ;;  %v437_v17 = vpack.c.bf16 %v422_v12, %v422_v12  ;;  %s407_s16 = scvt.s32.f32 %s1248_s15  ;;  %s1025_s19 = sshll.u32 %s1524_s14, 1 }
  0x19   : > { %v458_v18 = vunpack.c.l.b16 %v434_v9  ;;  %v455_v19 = vunpack.c.l.b16 %v431_v10  ;;  %v456_v20 = vunpack.c.l.b16 %v432_v11  ;;  %v438_v21 = vpack.c.bf16 %v423_v13, %v423_v13  ;;  %s354_s28 = sadd.s32 %s1232_s27, %s1025_s19  ;;  %s382_s13 = sadd.s32 %s1036_s12, %s1232_s27 }
  0x1a   : > { %v1253_v22 = vpack.c.b16 %v460_v15, %v459_v14  ;;  %v461_v23 = vunpack.c.l.b16 %v437_v17  ;;  %s1027_s25 = sshll.u32 %s354_s28, 3  ;;  %v413_v32 = vstv %s407_s16  ;;  %s1163_s14 = smov 8   ;;  %v1054_v17 = vld [vmem:[%s1503_s3] sm:$0xf] }
  0x1b   : > { %v1259_v24 = vpack.c.b16 %v458_v18, %v457_v16  ;;  %v1261_v25 = vpack.c.b16 %v456_v20, %v455_v19  ;;  %v462_v26 = vunpack.c.l.b16 %v438_v21  ;;  %s356_s9 = scalar_lea.vmem %s1500_s0, %s1027_s25  ;;  %s1038_s15 = sshll.u32 %s382_s13, 3  ;;  %v1073_v18 = vld [vmem:[%s1503_s3] sm:$0x30]  ;;  %v1046_v21 = vld [vmem:[%s1503_s3 + $0x8] sm:$0xf] }
  0x1c   : > { %561 = vrot.lane.b32.xlu1 %v1253_v22, %s1162_s29  ;;  %v493_v27 = vshrl.u32 %v1253_v22, 16  ;;  %v496_v28 = vshll.u32 %v1253_v22, 16  ;;  %v411_v36 = vld [vmem:[%s356_s9] sm:$0xff]  ;;  %v412_v37 = vld [vmem:[%s356_s9 + $0x8] sm:$0xff]  ;;  %s409_s10 = scalar_select %p408_p11, 1, 0  ;;  %v1055_v19 = vor.u32 %v1073_v18, %v1054_v17 }
  0x1d   : > { %559 = vrot.lane.b32.xlu0 %v1259_v24, %s1162_s29  ;;  %v486_v29 = vshrl.u32 %v1259_v24, 16  ;;  %v489_v30 = vshll.u32 %v1259_v24, 16  ;;  %557 = vrot.lane.b32.xlu2 %v1261_v25, %s1162_s29  ;;  %v1275_v31 = vpack.c.b16 %v462_v26, %v461_v23  ;;  %v479_v34 = vshrl.u32 %v1261_v25, 16  ;;  %s384_s27 = scalar_lea.vmem %s1502_s2, %s1038_s15  ;;  %v1074_v23 = vld [vmem:[%s1503_s3 + $0x8] sm:$0x30]  ;;  %p1068_p12 = scmp.ne.s32.totalorder %s1144_s18, 0 }
  0x1e   : > { %v534_v33 = vrot.slane %v496_v28, 1  ;;  %v482_v35 = vshll.u32 %v1261_v25, 16  ;;  %v414_v43 = vmul.f32 %v413_v32, %v411_v36  ;;  %v415_v46 = vmul.f32 %v413_v32, %v412_v37  ;;  %s410_s11 = scvt.s32.f32 %s409_s10  ;;  %v424_v58 = vld [vmem:[%s384_s27] sm:$0xff]  ;;  %v425_v59 = vld [vmem:[%s384_s27 + $0x8] sm:$0xff]  ;;  %v1062_v32 = vld [vmem:[%s1503_s3 + $0x10] sm:$0xf] }
  0x1f   : > { %v532_v39 = vrot.slane %v489_v30, 1  ;;  %v503_v42 = vshll.u32 %v1275_v31, 16  ;;  %v500_v45 = vshrl.u32 %v1275_v31, 16  ;;  %v481_v15 = vrot.slane %v479_v34, 7 }
  0x20   : > { %v535_v40 = vor.u32 %v534_v33, %v493_v27  ;;  %v530_v41 = vrot.slane %v482_v35, 1  ;;  %v429_v50 = vpack.c.bf16 %v414_v43, %v414_v43  ;;  %v430_v52 = vpack.c.bf16 %v415_v46, %v415_v46  ;;  %v1075_v33 = vld [vmem:[%s1503_s3 + $0x10] sm:$0x30] }
  0x21   : > { %v533_v44 = vor.u32 %v532_v39, %v486_v29  ;;  %v536_v49 = vrot.slane %v503_v42, 1  ;;  %v426_v55 = vstv %s410_s11  ;;  %v484_v16 = vor.u32 %v482_v35, %v481_v15 }
  0x22   : > { %v552_v47 = vsel %vm1288_vm2, %v535_v40, 0  ;;  %v531_v48 = vor.u32 %v530_v41, %v479_v34  ;;  %v453_v54 = vunpack.c.l.b16 %v429_v50  ;;  %v454_v57 = vunpack.c.l.b16 %v430_v52 }
  0x23   : > { %v551_v51 = vsel %vm1288_vm2, %v533_v44, 0  ;;  %v537_v56 = vor.u32 %v536_v49, %v500_v45  ;;  %v427_v61 = vmul.f32 %v426_v55, %v424_v58  ;;  %v428_v62 = vmul.f32 %v426_v55, %v425_v59 }
  0x24   : > { %579 = vrot.lane.b32.xlu1 %v552_v47, %s1163_s14  ;;  %v550_v53 = vsel %vm1288_vm2, %v531_v48, 0  ;;  %v1323_v60 = vpack.c.b16 %v454_v57, %v453_v54  ;;  %v678_v20 = vsel %vm637_vm3, %v1055_v19, 0  ;;  %v1047_v25 = vor.u32 %v1074_v23, %v1046_v21 }
  0x25   : > { %577 = vrot.lane.b32.xlu0 %v551_v51, %s1163_s14  ;;  %575 = vrot.lane.b32.xlu2 %v550_v53, %s1163_s14  ;;  %v553_v63 = vsel %vm1288_vm2, %v537_v56, 0  ;;  %v439_v1 = vpack.c.bf16 %v427_v61, %v427_v61  ;;  %v440_v2 = vpack.c.bf16 %v428_v62, %v428_v62  ;;  %v1063_v34 = vor.u32 %v1075_v33, %v1062_v32 }
  0x26   : > { %v475_v0 = vshll.u32 %v1323_v60, 16  ;;  %v472_v3 = vshrl.u32 %v1323_v60, 16  ;;  %1077 = vmatpush.bf16.msra.mxu1 %v678_v20  ;;  %v639_v26 = vsel %vm637_vm3, %v1047_v25, 0  ;;  %v523_v38 = vsel %vm1375_vm6, 0, %v484_v16 }
  0x27   : > { %v463_v5 = vunpack.c.l.b16 %v439_v1  ;;  %v464_v6 = vunpack.c.l.b16 %v440_v2  ;;  %648 = vmatpush.bf16.msra.mxu0 %v639_v26  ;;  %1076 = vmatpush.bf16.msra.mxu3 %v639_v26  ;;  %v717_v35 = vsel %vm637_vm3, %v1063_v34, 0  ;;  %v495_v43 = vrot.slane %v493_v27, 7 }
  0x28   : > { %v528_v4 = vrot.slane %v475_v0, 1  ;;  %1078 = vmatpush.bf16.msra.mxu2 %v717_v35  ;;  %v488_v44 = vrot.slane %v486_v29, 7  ;;  %v502_v29 = vrot.slane %v500_v45, 7 }
  0x29   : > { %v1334_v7 = vpack.c.b16 %v464_v6, %v463_v5  ;;  %v498_v47 = vor.u32 %v496_v28, %v495_v43 }
  0x2a   : > { %v529_v8 = vor.u32 %v528_v4, %v472_v3  ;;  %v491_v49 = vor.u32 %v489_v30, %v488_v44  ;;  %v474_v30 = vrot.slane %v472_v3, 7  ;;  %v505_v54 = vor.u32 %v503_v42, %v502_v29 }
  0x2b   : > { %v507_v9 = vshrl.u32 %v1334_v7, 16  ;;  %v510_v10 = vshll.u32 %v1334_v7, 16  ;;  %687 = vmatpush.bf16.msrb.mxu0 %v678_v20  ;;  %v525_v50 = vsel %vm1375_vm6, 0, %v498_v47 }
  0x2c   : > { %581 = vrot.lane.b32.xlu1 %v553_v63, %s1163_s14  ;;  %v549_v12 = vsel %vm1288_vm2, %v529_v8, 0  ;;  %v524_v51 = vsel %vm1375_vm6, 0, %v491_v49  ;;  %v477_v45 = vor.u32 %v475_v0, %v474_v30  ;;  %v526_v55 = vsel %vm1375_vm6, 0, %v505_v54 }
  0x2d   : > { %563 = vrot.lane.b32.xlu0 %v1275_v31, %s1162_s29  ;;  %555 = vrot.lane.b32.xlu2 %v1323_v60, %s1162_s29  ;;  %v538_v11 = vrot.slane %v510_v10, 1  ;;  %v509_v31 = vrot.slane %v507_v9, 7 }
  0x2e   : > { %v522_v59 = vsel %vm1375_vm6, 0, %v477_v45 }
  0x2f   : > { %v539_v13 = vor.u32 %v538_v11, %v507_v9  ;;  %v512_v0 = vor.u32 %v510_v10, %v509_v31 }
  0x31   : > { %v554_v14 = vsel %vm1288_vm2, %v539_v13, 0  ;;  %v527_v1 = vsel %vm1375_vm6, 0, %v512_v0 }
  0x34   : > { %565 = vrot.lane.b32.xlu1 %v1334_v7, %s1162_s29 }
  0x35   : > { %573 = vrot.lane.b32.xlu0 %v549_v12, %s1163_s14  ;;  %583 = vrot.lane.b32.xlu2 %v554_v14, %s1163_s14  ;;  %s1042_s14 = sshll.u32 %s1240_s8, 2 }
  0x36   : > { %s1441_s17 = scalar_lea.vmem %s1504_s4, %s1042_s14 }
  0x77   : > { %v558_v37 = vpop.permute.xlu2 %557 }
  0x78   : > { %v591_v39 = vsel %vm585_vm7, %v523_v38, %v558_v37 }
  0x7f   : > { %v576_v40 = vpop.permute.xlu2 %575 }
  0x80   : > { %v608_v41 = vsel %vm604_vm8, %v591_v39, %v576_v40 }
  0x81   : > { %1057 = vmatmul.msk.bf16.vlgmr.msra.gmra.mxu1 %vm628_vm9, %v608_v41  ;;  %1048 = vmatmul.msk.bf16.vlgmr.msra.gmra.mxu0 %vm628_vm9, %v608_v41 }
  0x82   : > { %726 = vmatpush.bf16.msra.mxu0 %v717_v35 }
  0x87   : > { %v556_v58 = vpop.permute.xlu2 %555 }
  0x88   : > { %v588_v62 = vsel %vm585_vm7, %v522_v59, %v556_v58 }
  0x8e   : > { %v562_v46 = vpop.permute.xlu1 %561 }
  0x8f   : > { %v560_v48 = vpop.permute.xlu0 %559  ;;  %v597_v52 = vsel %vm585_vm7, %v525_v50, %v562_v46  ;;  %v584_v4 = vpop.permute.xlu2 %583 }
  0x90   : > { %v594_v53 = vsel %vm585_vm7, %v524_v51, %v560_v48 }
  0x96   : > { %v580_v27 = vpop.permute.xlu1 %579 }
  0x97   : > { %v578_v22 = vpop.permute.xlu0 %577  ;;  %v612_v28 = vsel %vm604_vm8, %v597_v52, %v580_v27 }
  0x98   : > { %v610_v24 = vsel %vm604_vm8, %v594_v53, %v578_v22  ;;  %1065 = vmatmul.msk.bf16.vlgmr.msra.gmra.mxu2 %vm628_vm9, %v612_v28 }
  0x99   : > { %1049 = vmatmul.msk.bf16.vlgmr.msra.gmra.mxu3 %vm628_vm9, %v610_v24  ;;  %1058 = vmatmul.msk.bf16.gmra.mxu1 %vm628_vm9, %v610_v24 }
  0x9e   : > { %v582_v61 = vpop.permute.xlu1 %581 }
  0x9f   : > { %v564_v56 = vpop.permute.xlu0 %563 }
  0xa0   : > { %v600_v57 = vsel %vm585_vm7, %v526_v55, %v564_v56 }
  0xa1   : > { %v614_v63 = vsel %vm604_vm8, %v600_v57, %v582_v61 }
  0xa6   : > { %v566_v2 = vpop.permute.xlu1 %565 }
  0xa7   : > { %v574_v42 = vpop.permute.xlu0 %573  ;;  %v603_v3 = vsel %vm585_vm7, %v527_v1, %v566_v2 }
  0xa8   : > { %v606_v60 = vsel %vm604_vm8, %v588_v62, %v574_v42  ;;  %1066 = vmatmul.msk.bf16.gmra.mxu2 %vm628_vm9, %v614_v63  ;;  %v616_v5 = vsel %vm604_vm8, %v603_v3, %v584_v4 }
  0xa9   : > { %1050 = vmatmul.msk.bf16.gmra.mxu3 %vm628_vm9, %v612_v28  ;;  %1056 = vmatmul.msk.bf16.vlgmr.msrb.gmra.mxu0 %vm628_vm9, %v606_v60 }
  0xaa   : > { %1059 = vmatmul.msk.bf16.gmra.mxu1 %vm628_vm9, %v612_v28 }
  0xb8   : > { %1067 = vmatmul.msk.bf16.gmra.mxu2 %vm628_vm9, %v616_v5 }
  0xb9   : > { %1051 = vmatmul.msk.bf16.gmra.mxu3 %vm628_vm9, %v614_v63  ;;  %1064 = vmatmul.msk.bf16.vlgmr.msra.gmra.mxu0 %vm628_vm9, %v610_v24 }
  0xfe   : > { %v694_v6 = vpop.f32.mrf.mxu1  ;;  %v650_v8 = vpop.f32.mrf.mxu0 }
 0x106   : > { %v696_v9 = vpop.f32.mrf.mxu1  ;;  %v652_v12 = vpop.f32.mrf.mxu0 }
 0x116   : > { %v699_v18 = vpop.f32.mrf.mxu1 }
 0x11b   : > { %v733_v7 = vpop.f32.mrf.mxu2 }
 0x11c   : > { %v655_v10 = vpop.f32.mrf.mxu3 }
 0x11d   : > { %v695_v11 = vadd.f32 %v694_v6, %v655_v10 }
 0x11e   : > { %v701_v34 = vpop.f32.mrf.mxu1 }
 0x11f   : > { %v1436_v13 = vadd.f32 %v733_v7, %v695_v11 }
 0x121   : > { %v758_v14 = vpack.c.bf16 %v1436_v13, %v1436_v13 }
 0x123   : > { %767 = vst.msk [vmem:[%s1441_s17 + $0x8] sm:$0xf] %vm764_vm10, %v758_v14  ;;  %v735_v15 = vpop.f32.mrf.mxu2 }
 0x124   : > { %v657_v16 = vpop.f32.mrf.mxu3 }
 0x125   : > { %v697_v17 = vadd.f32 %v696_v9, %v657_v16 }
 0x126   : > { %v689_v19 = vpop.f32.mrf.mxu0 }
 0x127   : > { %v751_v20 = vadd.f32 %v735_v15, %v697_v17  ;;  %v690_v38 = vadd.f32 %v689_v19, %v650_v8  ;;  %v704_v47 = vpop.f32.mrf.mxu1 }
 0x129   : > { %v759_v21 = vpack.c.bf16 %v751_v20, %v751_v20 }
 0x12b   : > { %768 = vst.msk [vmem:[%s1441_s17 + $0xc] sm:$0xf] %vm764_vm10, %v759_v21  ;;  %v738_v23 = vpop.f32.mrf.mxu2 }
 0x12c   : > { %v660_v25 = vpop.f32.mrf.mxu3 }
 0x12d   : > { %v700_v26 = vadd.f32 %v699_v18, %v660_v25 }
 0x12e   : > { %v691_v32 = vpop.f32.mrf.mxu0 }
 0x12f   : > { %v752_v33 = vadd.f32 %v738_v23, %v700_v26  ;;  %v692_v50 = vadd.f32 %v691_v32, %v652_v12  ;;  %v706_v28 = vpop.f32.mrf.mxu1 }
 0x131   : > { %v760_v35 = vpack.c.bf16 %v752_v33, %v752_v33 }
 0x133   : > { %769 = vst.msk [vmem:[%s1441_s17 + $0x10] sm:$0xf] %vm764_vm10, %v760_v35  ;;  %v740_v36 = vpop.f32.mrf.mxu2 }
 0x134   : > { %v662_v37 = vpop.f32.mrf.mxu3 }
 0x135   : > { %v702_v39 = vadd.f32 %v701_v34, %v662_v37 }
 0x136   : > { %v728_v40 = vpop.f32.mrf.mxu0 }
 0x137   : > { %v753_v41 = vadd.f32 %v740_v36, %v702_v39  ;;  %v748_v43 = vadd.f32 %v728_v40, %v690_v38 }
 0x139   : > { %v761_v44 = vpack.c.bf16 %v753_v41, %v753_v41  ;;  %v756_v46 = vpack.c.bf16 %v748_v43, %v748_v43 }
 0x13b   : > { %770 = vst.msk [vmem:[%s1441_s17 + $0x14] sm:$0xf] %vm764_vm10, %v761_v44  ;;  %v743_v49 = vpop.f32.mrf.mxu2 }
 0x13c   : > { %765 = vst.msk [vmem:[%s1441_s17] sm:$0xf] %vm764_vm10, %v756_v46  ;;  %v665_v48 = vpop.f32.mrf.mxu3 }
 0x13d   : > { %v705_v51 = vadd.f32 %v704_v47, %v665_v48 }
 0x13e   : > { %v730_v52 = vpop.f32.mrf.mxu0 }
 0x13f   : > { %v754_v27 = vadd.f32 %v743_v49, %v705_v51  ;;  %v749_v29 = vadd.f32 %v730_v52, %v692_v50 }
 0x141   : > { %v762_v53 = vpack.c.bf16 %v754_v27, %v754_v27  ;;  %v757_v22 = vpack.c.bf16 %v749_v29, %v749_v29 }
 0x143   : > { %771 = vst.msk [vmem:[%s1441_s17 + $0x18] sm:$0xf] %vm764_vm10, %v762_v53  ;;  %v745_v54 = vpop.f32.mrf.mxu2 }
 0x144   : > { %766 = vst.msk [vmem:[%s1441_s17 + $0x4] sm:$0xf] %vm764_vm10, %v757_v22  ;;  %v667_v24 = vpop.f32.mrf.mxu3 }
 0x145   : > { %v707_v30 = vadd.f32 %v706_v28, %v667_v24 }
 0x147   : > { %v755_v45 = vadd.f32 %v745_v54, %v707_v30  ;;  %776 = sbr.rel (%p1068_p12) target bundleno = 334 (0x14e), region = 40 }
 0x149   : > { %v763_v55 = vpack.c.bf16 %v755_v45, %v755_v45 }
 0x14b   : > { %772 = vst.msk [vmem:[%s1441_s17 + $0x1c] sm:$0xf] %vm764_vm10, %v763_v55 }
 0x14c   : > { %vm777_vm11 = vcmask 25600   ;;  %v1164_v56 = vmov 0.0  }
 0x14d   : > { %778 = vst.msk [vmem:[%s1237_s7] sm:$0x3] %vm777_vm11, %v1164_v56 }
 0x14e PF: > { %v779_v57 = vsel %vm585_vm7, %v748_v43, 0.0  ;;  %v780_v58 = vsel %vm585_vm7, %v749_v29, 0.0  ;;  %v782_v59 = vsel %vm585_vm7, %v1436_v13, 0.0  ;;  %v784_v62 = vsel %vm585_vm7, %v751_v20, 0.0 }
 0x14f   : > { %v781_v61 = vadd.f32 %v780_v58, %v779_v57  ;;  %v800_v63 = vmul.f32 %v748_v43, %v748_v43  ;;  %v801_v31 = vmul.f32 %v749_v29, %v749_v29  ;;  %v802_v42 = vmul.f32 %v1436_v13, %v1436_v13 }
 0x150   : > { %v803_v0 = vmul.f32 %v751_v20, %v751_v20  ;;  %v786_v1 = vsel %vm585_vm7, %v752_v33, 0.0  ;;  %v804_v2 = vmul.f32 %v752_v33, %v752_v33  ;;  %v788_v7 = vsel %vm585_vm7, %v753_v41, 0.0 }
 0x151   : > { %v783_v60 = vadd.f32 %v782_v59, %v781_v61  ;;  %v808_v3 = vsel %vm585_vm7, %v800_v63, 0.0  ;;  %v809_v4 = vsel %vm585_vm7, %v801_v31, 0.0  ;;  %v811_v8 = vsel %vm585_vm7, %v802_v42, 0.0 }
 0x152   : > { %v810_v6 = vadd.f32 %v809_v4, %v808_v3  ;;  %v805_v9 = vmul.f32 %v753_v41, %v753_v41  ;;  %v813_v10 = vsel %vm585_vm7, %v803_v0, 0.0  ;;  %v790_v13 = vsel %vm585_vm7, %v754_v27, 0.0 }
 0x153   : > { %v785_v5 = vadd.f32 %v784_v62, %v783_v60  ;;  %v806_v14 = vmul.f32 %v754_v27, %v754_v27  ;;  %v815_v15 = vsel %vm585_vm7, %v804_v2, 0.0  ;;  %v792_v18 = vsel %vm585_vm7, %v755_v45, 0.0 }
 0x154   : > { %v812_v12 = vadd.f32 %v811_v8, %v810_v6  ;;  %v807_v19 = vmul.f32 %v755_v45, %v755_v45  ;;  %v817_v20 = vsel %vm585_vm7, %v805_v9, 0.0  ;;  %v829_v50 = vld [vmem:[%s1237_s7] sm:$0x3]  ;;  %vm833_vm12 = vcmask 25600  }
 0x155   : > { %v787_v11 = vadd.f32 %v786_v1, %v785_v5  ;;  %v819_v25 = vsel %vm585_vm7, %v806_v14, 0.0 }
 0x156   : > { %v814_v17 = vadd.f32 %v813_v10, %v812_v12  ;;  %v821_v33 = vsel %vm585_vm7, %v807_v19, 0.0 }
 0x157   : > { %v789_v16 = vadd.f32 %v788_v7, %v787_v11 }
 0x158   : > { %v816_v23 = vadd.f32 %v815_v15, %v814_v17 }
 0x159   : > { %v791_v21 = vadd.f32 %v790_v13, %v789_v16 }
 0x15a   : > { %v818_v32 = vadd.f32 %v817_v20, %v816_v23 }
 0x15b   : > { %v793_v26 = vadd.f32 %v792_v18, %v791_v21 }
 0x15c   : > { %v820_v35 = vadd.f32 %v819_v25, %v818_v32 }
 0x15d   : > { %v794_v34 = vrot.slane %v793_v26, 4 }
 0x15e   : > { %v822_v37 = vadd.f32 %v821_v33, %v820_v35 }
 0x15f   : > { %v795_v36 = vadd.f32 %v794_v34, %v793_v26 }
 0x160   : > { %v823_v39 = vrot.slane %v822_v37, 4 }
 0x161   : > { %v796_v38 = vrot.slane %v795_v36, 2 }
 0x162   : > { %v824_v41 = vadd.f32 %v823_v39, %v822_v37 }
 0x163   : > { %v797_v40 = vadd.f32 %v796_v38, %v795_v36 }
 0x164   : > { %v825_v44 = vrot.slane %v824_v41, 2 }
 0x165   : > { %v798_v43 = vrot.slane %v797_v40, 1 }
 0x166   : > { %v826_v46 = vadd.f32 %v825_v44, %v824_v41 }
 0x167   : > { %v799_v47 = vadd.f32 %v798_v43, %v797_v40 }
 0x168   : > { %v827_v48 = vrot.slane %v826_v46, 1 }
 0x16a   : > { %v828_v49 = vadd.f32 %v827_v48, %v826_v46 }
 0x16c   : > { %v831_v51 = vsel %vm519_vm4, %v799_v47, %v828_v49 }
 0x16d   : > { %v832_v52 = vadd.f32 %v831_v51, %v829_v50 }
 0x16f   : > { %834 = vst.msk [vmem:[%s1237_s7] sm:$0x3] %vm833_vm12, %v832_v52 }
 0x170 PF: > { %s16_s22 = sadd.s32 1, %s1160_s22   ;;  %s1511_s18 = smov %s1152_s20 }
 0x171   : > { %p13_p13 = scmp.ge.s32.totalorder %s16_s22, 10   ;;  %s1512_s19 = smov %s1156_s21 }
 0x172   : > { %s1513_s20 = smov %s1516_s23  ;;  %s1514_s21 = smov %s1520_s24 }
 0x173   :  { %15 = sbr.rel (!%p13_p13) target bundleno = 3 (0x3), region = 88 }

// kernel: residual_block.5
= control target key start
LH: loop header
LB: loop body
LE: loop exit
PB: predicated region body
PF: predicated region fallthrough
CT: control target
= control target key end

     0   :  { %s1417_s24 = smov 0   ;;  %s1419_s25 = smov 0   ;;  %s1767_s0 = inlined_call_operand.vmem [shape: f32[2,2,4], index: 0, kind: input, shape index: {}]   ;;  %s1768_s1 = inlined_call_operand.vmem [shape: f32[2,2,4], index: 1, kind: input, shape index: {}]   ;;  %s1769_s2 = inlined_call_operand.vmem [shape: bf16[2,16,16,4], index: 2, kind: input, shape index: {}, may-alias: {2,3,4}]   ;;  %s1770_s3 = inlined_call_operand.vmem [shape: bf16[2,16,16,4], index: 3, kind: input, shape index: {}, may-alias: {2,3,4}]   ;;  %s1771_s4 = inlined_call_operand.vmem [shape: bf16[2,16,16,4], index: 4, kind: input, shape index: {}, may-alias: {2,3,4}]   ;;  %s1772_s5 = inlined_call_operand.vmem [shape: bf16[3,12,4], index: 5, kind: input, shape index: {}]   ;;  %s1773_s6 = inlined_call_operand.vmem [shape: f32[2,16,16,4], index: 6, kind: input, shape index: {}]   ;;  %s1774_s7 = inlined_call_operand.vmem [shape: f32[2,16,16,4], index: 7, kind: output, shape index: {}]  }
   0x1   :  { %s1421_s26 = smov 0   ;;  %s1423_s27 = smov 0  }
   0x2   :  { %s1425_s28 = smov 0  }
   0x3 LB: > { %s26_s29 = sadd.s32 1, %s1365_s26  ;;  %s29_s30 = sadd.s32 1, %s1369_s27  ;;  %s1373_s28 = sphi %s1425_s28, %s17_s28   ;;  %s1369_s27 = sphi %s1423_s27, %s1783_s27   ;;  %s1365_s26 = sphi %s1421_s26, %s1782_s26   ;;  %s1361_s25 = sphi %s1419_s25, %s1781_s25   ;;  %s1357_s24 = sphi %s1417_s24, %s1780_s24  }
   0x4   : > { %p27_p0 = scmp.ge.s32.totalorder %s26_s29, 4  ;;  %p1196_p1 = scmp.ge.s32.totalorder %s1373_s28, 1 }
   0x5   : > { %p359_p2 = scmp.lt.s32.totalorder %s1373_s28, 9 }
   0x6   : > { %s1785_s29 = smov (%p27_p0, %s26_s29), 0  ;;  %s1787_s30 = smov (!%p27_p0, %s29_s30), %s1369_s27 }
   0x7   : > { %p360_p3 = pnand %p1196_p1, %p359_p2  ;;  %p31_p4 = scmp.ge.s32.totalorder %s1787_s30, 2 }
   0x8   : > { %p445_p5 = scmp.lt.s32.totalorder (!%p360_p3), %s1361_s25, 1  ;;  %s1450_s8 = sshll.u32 (!%p360_p3), %s1357_s24, 2 }
   0x9   : > { %s1789_s30 = smov (%p31_p4, %s1787_s30), 0  ;;  %363 = sbr.rel (%p360_p3) target bundleno = 365 (0x16d), region = 48 }
   0xa   : > { %p473_p6 = scmp.lt.s32.totalorder (!%p360_p3), %s1450_s8, 15  ;;  %s1200_s13 = sadd.s32 (!%p360_p3), 4294967295, %s1450_s8 }
   0xb   : > { %p455_p7 = scmp.gt.s32.totalorder (!%p360_p3), %s1200_s13, 0  ;;  %p1201_p8 = scmp.lt.s32.totalorder (!%p360_p3), %s1200_s13, 15 }
   0xc   : > { %s482_s21 = sadd.s32 (!%p360_p3), 4, %s1450_s8  ;;  %p539_p10 = scmp.gt.s32.totalorder (!%p360_p3), %s1357_s24, 0 }
   0xd   : > { %p1475_p9 = scmp.lt.s32.totalorder (!%p360_p3), %s482_s21, 15  ;;  %p542_p11 = scmp.lt.s32.totalorder (!%p360_p3), %s1357_s24, 3 }
   0xe   : > { %s1791_s25 = smov (!%p445_p5, %s1361_s25), 1  ;;  %s1793_s13 = smov (!%p455_p7, %s1200_s13), 0  ;;  %vm730_vm3 = vcmask 1047552   ;;  %vm731_vm4 = vsmask.f32 7424  ;;  %vm821_vm6 = vcmask 1045504  }
   0xf   : > { %s1197_s9 = sshll.u32 %s1791_s25, 1  ;;  %s1464_s15 = sshll.u32 %s1791_s25, 5  ;;  %vm1553_vm5 = vmand %vm730_vm3, %vm731_vm4  ;;  %vm703_vm7 = vcmask 1040384   ;;  %vm704_vm8 = vsmask.f32 256  ;;  %vm769_vm10 = vcmask 31744  }
  0x10   : > { %s448_s12 = scalar_lea.vmem %s1767_s0, %s1197_s9  ;;  %s1795_s13 = smov (!%p1201_p8, %s1793_s13), 15  ;;  %vm1632_vm9 = vmand %vm703_vm7, %vm704_vm8  ;;  %vm788_vm11 = vcmask 64512   ;;  %vm812_vm12 = vcmask 97280  }
  0x11   : > { %v521_v0 = vld [vmem:[%s448_s12] sm:$0x3]  ;;  %s474_s14 = scalar_select %p473_p6, %s1450_s8, 15 }
  0x12   : > { %v522_v1 = vmul.f32 0.00390625, %v521_v0  ;;  %s1206_s18 = sshll.u32 %s1795_s13, 1  ;;  %s1797_s21 = smov (!%p1475_p9, %s482_s21), 15 }
  0x13   : > { %s1210_s16 = sshll.u32 %s474_s14, 1  ;;  %s463_s20 = sadd.s32 %s1464_s15, %s1206_s18 }
  0x14   : > { %v523_v2 = vmul.f32 %v522_v1, %v522_v1  ;;  %s1467_s17 = sadd.s32 %s1210_s16, %s1464_s15  ;;  %s1208_s11 = sshll.u32 %s463_s20, 2  ;;  %v1482_v11 = vperm.slane %v522_v1, 0 }
  0x15   : > { %s1212_s19 = sshll.u32 %s1467_s17, 2  ;;  %s465_s16 = scalar_lea.vmem %s1769_s2, %s1208_s11 }
  0x16   : > { %v525_v3 = vrot.slane %v523_v2, 7  ;;  %s479_s10 = scalar_lea.vmem %s1770_s3, %s1212_s19  ;;  %v1260_v23 = vld [vmem:[%s465_s16] sm:$0xff]   ;;  %s1799_s21 = smov (!%p1475_p9, %s1797_s21), 15 }
  0x17   : > { %v1284_v8 = vld [vmem:[%s479_s10 + $0x10] sm:$0xff]   ;;  %v1283_v10 = vld [vmem:[%s479_s10 + $0x8] sm:$0xff]   ;;  %v1268_v12 = vld [vmem:[%s479_s10] sm:$0xff]   ;;  %v1261_v30 = vunpack.c.l.bf16 %v1260_v23  ;;  %v1262_v36 = vunpack.c.h.bf16 %v1260_v23  ;;  %s1217_s8 = sshll.u32 %s1799_s21, 1  ;;  %s1376_s12 = smov 8  }
  0x18   : > { %v527_v4 = vsub.f32 %v522_v1, %v525_v3  ;;  %v1285_v13 = vld [vmem:[%s479_s10 + $0x18] sm:$0xff]   ;;  %v1277_v15 = vunpack.c.l.bf16 %v1284_v8  ;;  %v1278_v16 = vunpack.c.h.bf16 %v1284_v8  ;;  %v1273_v17 = vunpack.c.l.bf16 %v1283_v10  ;;  %s1505_s18 = scalar_select %p539_p10, 1, 0 }
  0x19   : > { %v1274_v18 = vunpack.c.h.bf16 %v1283_v10  ;;  %v1269_v20 = vunpack.c.l.bf16 %v1268_v12  ;;  %v1270_v21 = vunpack.c.h.bf16 %v1268_v12  ;;  %v1281_v22 = vunpack.c.l.bf16 %v1285_v13  ;;  %s491_s19 = sadd.s32 %s1217_s8, %s1464_s15  ;;  %s1375_s10 = smov 4  }
  0x1a   : > { %v528_v5 = vadd.f32 1e-05, %v527_v4  ;;  %v593_v25 = vsub.f32 %v1277_v15, %v1482_v11  ;;  %v1282_v26 = vunpack.c.h.bf16 %v1285_v13  ;;  %v594_v27 = vsub.f32 %v1278_v16, %v1482_v11  ;;  %s1515_s20 = sshll.u32 %s491_s19, 2  ;;  %s541_s15 = scvt.s32.f32 %s1505_s18 }
  0x1b   : > { %v591_v28 = vsub.f32 %v1273_v17, %v1482_v11  ;;  %v592_v29 = vsub.f32 %v1274_v18, %v1482_v11  ;;  %v589_v32 = vsub.f32 %v1269_v20, %v1482_v11  ;;  %v590_v33 = vsub.f32 %v1270_v21, %v1482_v11  ;;  %s493_s23 = scalar_lea.vmem %s1771_s4, %s1515_s20  ;;  %s1223_s25 = sshll.u32 %s1467_s17, 3 }
  0x1c   : > { %1331 = vrsqrt.f32 %v528_v5  ;;  %vm535_vm0 = vweird.f32 %v528_v5  ;;  %v595_v34 = vsub.f32 %v1281_v22, %v1482_v11  ;;  %v596_v37 = vsub.f32 %v1282_v26, %v1482_v11  ;;  %s1549_s11 = scalar_select %p542_p11, 1, 0 }
  0x1d   : > { %v550_v41 = vsub.f32 %v1261_v30, %v1482_v11  ;;  %v551_v49 = vsub.f32 %v1262_v36, %v1482_v11  ;;  %s1703_s13 = scalar_lea.vmem %s1773_s6, %s1223_s25  ;;  %s1713_s8 = scalar_lea.vmem %s1774_s7, %s1223_s25 }
  0x1e   : > { %s544_s24 = scvt.s32.f32 %s1549_s11 }
  0x22   : > { %v1332_v6 = vpop.eup %1331 }
  0x23   : > { %v530_v7 = vmul.f32 %v1332_v6, %v528_v5  ;;  %vm536_vm1 = vweird.f32 %v1332_v6 }
  0x24   : > { %vm537_vm2 = vmor %vm535_vm0, %vm536_vm1 }
  0x25   : > { %v531_v9 = vmul.f32 %v1332_v6, %v530_v7 }
  0x27   : > { %v532_v14 = vmul.f32 0.5, %v531_v9 }
  0x29   : > { %v533_v19 = vsub.f32 1.5, %v532_v14  ;;  %v557_v14 = vstv %s541_s15 }
  0x2b   : > { %v534_v24 = vmul.f32 %v1332_v6, %v533_v19  ;;  %v1264_v19 = vld [vmem:[%s493_s23] sm:$0xff]  }
  0x2d   : > { %v538_v31 = vsel %vm537_vm2, %v1332_v6, %v534_v24 }
  0x2e   : > { %v1499_v35 = vperm.slane %v538_v31, 1 }
  0x30   : > { %v601_v38 = vmul.f32 %v593_v25, %v1499_v35  ;;  %v602_v39 = vmul.f32 %v594_v27, %v1499_v35  ;;  %v599_v40 = vmul.f32 %v591_v28, %v1499_v35  ;;  %v600_v42 = vmul.f32 %v592_v29, %v1499_v35  ;;  %v1258_v27 = vld [vmem:[%s1772_s5 + $0x10] sm:$0x30] }
  0x31   : > { %v597_v43 = vmul.f32 %v589_v32, %v1499_v35  ;;  %v598_v44 = vmul.f32 %v590_v33, %v1499_v35  ;;  %v603_v45 = vmul.f32 %v595_v34, %v1499_v35  ;;  %v604_v53 = vmul.f32 %v596_v37, %v1499_v35 }
  0x32   : > { %v609_v46 = vmax.f32 %v601_v38, 0.0  ;;  %v610_v47 = vmax.f32 %v602_v39, 0.0  ;;  %v607_v48 = vmax.f32 %v599_v40, 0.0  ;;  %v608_v50 = vmax.f32 %v600_v42, 0.0 }
  0x33   : > { %v605_v51 = vmax.f32 %v597_v43, 0.0  ;;  %v606_v52 = vmax.f32 %v598_v44, 0.0  ;;  %v611_v57 = vmax.f32 %v603_v45, 0.0  ;;  %v612_v61 = vmax.f32 %v604_v53, 0.0 }
  0x34   : > { %v619_v54 = vpack.c.bf16 %v609_v46, %v609_v46  ;;  %v620_v55 = vpack.c.bf16 %v610_v47, %v610_v47  ;;  %v617_v56 = vpack.c.bf16 %v607_v48, %v607_v48  ;;  %v618_v58 = vpack.c.bf16 %v608_v50, %v608_v50 }
  0x35   : > { %v615_v59 = vpack.c.bf16 %v605_v51, %v605_v51  ;;  %v616_v60 = vpack.c.bf16 %v606_v52, %v606_v52  ;;  %v621_v1 = vpack.c.bf16 %v611_v57, %v611_v57  ;;  %v622_v5 = vpack.c.bf16 %v612_v61, %v612_v61 }
  0x36   : > { %v643_v62 = vunpack.c.l.b16 %v619_v54  ;;  %v644_v63 = vunpack.c.l.b16 %v620_v55  ;;  %v641_v0 = vunpack.c.l.b16 %v617_v56  ;;  %v642_v2 = vunpack.c.l.b16 %v618_v58 }
  0x37   : > { %v639_v3 = vunpack.c.l.b16 %v615_v59  ;;  %v640_v4 = vunpack.c.l.b16 %v616_v60  ;;  %v645_v7 = vunpack.c.l.b16 %v621_v1  ;;  %v553_v8 = vmul.f32 %v1499_v35, %v550_v41 }
  0x38   : > { %v1522_v6 = vpack.c.b16 %v644_v63, %v643_v62  ;;  %v554_v9 = vmul.f32 %v1499_v35, %v551_v49  ;;  %v1527_v10 = vpack.c.b16 %v642_v2, %v641_v0  ;;  %v646_v13 = vunpack.c.l.b16 %v622_v5 }
  0x39   : > { %v1529_v12 = vpack.c.b16 %v640_v4, %v639_v3  ;;  %v555_v17 = vmax.f32 %v553_v8, 0.0  ;;  %v1265_v29 = vunpack.c.l.bf16 %v1264_v19  ;;  %v1266_v38 = vunpack.c.h.bf16 %v1264_v19  ;;  %v1230_v19 = vld [vmem:[%s1772_s5 + $0x8] sm:$0xf] }
  0x3a   : > { %745 = vrot.lane.b32.xlu1 %v1522_v6, %s1375_s10  ;;  %v677_v15 = vshrl.u32 %v1522_v6, 16  ;;  %v680_v16 = vshll.u32 %v1522_v6, 16  ;;  %v556_v18 = vmax.f32 %v554_v9, 0.0  ;;  %743 = vrot.lane.b32.xlu0 %v1527_v10, %s1375_s10  ;;  %v670_v20 = vshrl.u32 %v1527_v10, 16 }
  0x3b   : > { %v673_v21 = vshll.u32 %v1527_v10, 16  ;;  %741 = vrot.lane.b32.xlu2 %v1529_v12, %s1375_s10  ;;  %v1541_v22 = vpack.c.b16 %v646_v13, %v645_v7  ;;  %v663_v24 = vshrl.u32 %v1529_v12, 16  ;;  %v666_v25 = vshll.u32 %v1529_v12, 16  ;;  %v1238_v13 = vld [vmem:[%s1772_s5] sm:$0xf] }
  0x3c   : > { %v718_v23 = vrot.slane %v680_v16, 1  ;;  %v558_v26 = vmul.f32 %v557_v14, %v555_v17  ;;  %v559_v33 = vmul.f32 %v557_v14, %v556_v18  ;;  %v564_v45 = vsub.f32 %v1265_v29, %v1482_v11  ;;  %v1256_v14 = vld [vmem:[%s1772_s5] sm:$0x30] }
  0x3d   : > { %v716_v28 = vrot.slane %v673_v21, 1  ;;  %v714_v31 = vrot.slane %v666_v25, 1  ;;  %v687_v32 = vshll.u32 %v1541_v22, 16  ;;  %v684_v36 = vshrl.u32 %v1541_v22, 16 }
  0x3e   : > { %v719_v30 = vor.u32 %v718_v23, %v677_v15  ;;  %v613_v37 = vpack.c.bf16 %v558_v26, %v558_v26  ;;  %v614_v42 = vpack.c.bf16 %v559_v33, %v559_v33  ;;  %v565_v46 = vsub.f32 %v1266_v38, %v1482_v11  ;;  %v1257_v23 = vld [vmem:[%s1772_s5 + $0x8] sm:$0x30]  ;;  %v1246_v26 = vld [vmem:[%s1772_s5 + $0x10] sm:$0xf] }
  0x3f   : > { %v717_v34 = vor.u32 %v716_v28, %v670_v20  ;;  %v715_v40 = vor.u32 %v714_v31, %v663_v24  ;;  %v720_v41 = vrot.slane %v687_v32, 1  ;;  %v566_v50 = vmul.f32 %v564_v45, %v1499_v35 }
  0x40   : > { %v736_v39 = vsel %vm1553_vm5, %v719_v30, 0  ;;  %v637_v44 = vunpack.c.l.b16 %v613_v37  ;;  %v638_v48 = vunpack.c.l.b16 %v614_v42  ;;  %v567_v51 = vmul.f32 %v565_v46, %v1499_v35 }
  0x41   : > { %v735_v43 = vsel %vm1553_vm5, %v717_v34, 0  ;;  %v734_v47 = vsel %vm1553_vm5, %v715_v40, 0  ;;  %v721_v49 = vor.u32 %v720_v41, %v684_v36  ;;  %v570_v11 = vstv %s544_s24 }
  0x42   : > { %763 = vrot.lane.b32.xlu1 %v736_v39, %s1376_s12  ;;  %761 = vrot.lane.b32.xlu0 %v735_v43, %s1376_s12  ;;  %v1583_v52 = vpack.c.b16 %v638_v48, %v637_v44  ;;  %v568_v53 = vmax.f32 %v566_v50, 0.0  ;;  %v569_v54 = vmax.f32 %v567_v51, 0.0  ;;  %v665_v9 = vrot.slane %v663_v24, 7 }
  0x43   : > { %759 = vrot.lane.b32.xlu2 %v734_v47, %s1376_s12  ;;  %v737_v56 = vsel %vm1553_vm5, %v721_v49, 0  ;;  %v1239_v17 = vor.u32 %v1256_v14, %v1238_v13  ;;  %v1231_v24 = vor.u32 %v1257_v23, %v1230_v19  ;;  %v1247_v28 = vor.u32 %v1258_v27, %v1246_v26 }
  0x44   : > { %v659_v55 = vshll.u32 %v1583_v52, 16  ;;  %v571_v57 = vmul.f32 %v570_v11, %v568_v53  ;;  %v572_v58 = vmul.f32 %v570_v11, %v569_v54  ;;  %v656_v59 = vshrl.u32 %v1583_v52, 16 }
  0x45   : > { %v668_v12 = vor.u32 %v666_v25, %v665_v9  ;;  %v862_v18 = vsel %vm821_vm6, %v1239_v17, 0  ;;  %v823_v25 = vsel %vm821_vm6, %v1231_v24, 0  ;;  %v901_v29 = vsel %vm821_vm6, %v1247_v28, 0 }
  0x46   : > { %v712_v60 = vrot.slane %v659_v55, 1  ;;  %v623_v61 = vpack.c.bf16 %v571_v57, %v571_v57  ;;  %v624_v62 = vpack.c.bf16 %v572_v58, %v572_v58  ;;  %1287 = vmatpush.bf16.msra.mxu1 %v862_v18  ;;  %832 = vmatpush.bf16.msra.mxu0 %v823_v25  ;;  %v679_v39 = vrot.slane %v677_v15, 7 }
  0x47   : > { %1286 = vmatpush.bf16.msra.mxu3 %v823_v25  ;;  %1288 = vmatpush.bf16.msra.mxu2 %v901_v29  ;;  %v707_v33 = vsel %vm1632_vm9, 0, %v668_v12  ;;  %v672_v40 = vrot.slane %v670_v20, 7  ;;  %v686_v20 = vrot.slane %v684_v36, 7 }
  0x48   : > { %v647_v35 = vunpack.c.l.b16 %v623_v61  ;;  %v648_v63 = vunpack.c.l.b16 %v624_v62  ;;  %v713_v0 = vor.u32 %v712_v60, %v656_v59  ;;  %v682_v42 = vor.u32 %v680_v16, %v679_v39 }
  0x49   : > { %v675_v44 = vor.u32 %v673_v21, %v672_v40  ;;  %v658_v21 = vrot.slane %v656_v59, 7  ;;  %v689_v49 = vor.u32 %v687_v32, %v686_v20 }
  0x4a   : > { %765 = vrot.lane.b32.xlu1 %v737_v56, %s1376_s12  ;;  %747 = vrot.lane.b32.xlu0 %v1541_v22, %s1375_s10  ;;  %v1598_v1 = vpack.c.b16 %v648_v63, %v647_v35  ;;  %v733_v4 = vsel %vm1553_vm5, %v713_v0, 0  ;;  %v709_v45 = vsel %vm1632_vm9, 0, %v682_v42 }
  0x4b   : > { %739 = vrot.lane.b32.xlu2 %v1583_v52, %s1375_s10  ;;  %871 = vmatpush.bf16.msrb.mxu0 %v862_v18  ;;  %v708_v46 = vsel %vm1632_vm9, 0, %v675_v44  ;;  %v661_v36 = vor.u32 %v659_v55, %v658_v21  ;;  %v710_v50 = vsel %vm1632_vm9, 0, %v689_v49  ;;  %v979_v44 = vld [vmem:[%s1703_s13 + $0x18] sm:$0xff]  ;;  %v980_v21 = vld [vmem:[%s1703_s13 + $0x20] sm:$0xff] }
  0x4c   : > { %v691_v2 = vshrl.u32 %v1598_v1, 16  ;;  %v694_v3 = vshll.u32 %v1598_v1, 16 }
  0x4d   : > { %v706_v54 = vsel %vm1632_vm9, 0, %v661_v36 }
  0x4e   : > { %v722_v5 = vrot.slane %v694_v3, 1  ;;  %v693_v22 = vrot.slane %v691_v2, 7 }
  0x50   : > { %v723_v7 = vor.u32 %v722_v5, %v691_v2  ;;  %v696_v55 = vor.u32 %v694_v3, %v693_v22 }
  0x52   : > { %749 = vrot.lane.b32.xlu1 %v1598_v1, %s1375_s10  ;;  %757 = vrot.lane.b32.xlu0 %v733_v4, %s1376_s12  ;;  %v738_v8 = vsel %vm1553_vm5, %v723_v7, 0  ;;  %v711_v60 = vsel %vm1632_vm9, 0, %v696_v55  ;;  %v976_v55 = vld [vmem:[%s1703_s13] sm:$0xff] }
  0x53   : > { %767 = vrot.lane.b32.xlu2 %v738_v8, %s1376_s12  ;;  %s452_s12 = scalar_lea.vmem %s1768_s1, %s1197_s9 }
  0x54   : > { %v940_v63 = vld [vmem:[%s452_s12] sm:$0x3] }
  0x55   : > { %v941_v0 = vmul.f32 0.00390625, %v940_v63 }
  0x57   : > { %v942_v1 = vmul.f32 %v941_v0, %v941_v0  ;;  %v1698_v25 = vperm.slane %v941_v0, 0 }
  0x59   : > { %v944_v2 = vrot.slane %v942_v1, 7 }
  0x5b   : > { %v946_v3 = vsub.f32 %v941_v0, %v944_v2 }
  0x5d   : > { %v947_v4 = vadd.f32 1e-05, %v946_v3 }
  0x5f   : > { %1333 = vrsqrt.f32 %v947_v4  ;;  %vm954_vm13 = vweird.f32 %v947_v4 }
  0x65   : > { %v1334_v5 = vpop.eup %1333 }
  0x66   : > { %v949_v7 = vmul.f32 %v1334_v5, %v947_v4  ;;  %vm955_vm14 = vweird.f32 %v1334_v5 }
  0x67   : > { %vm956_vm15 = vmor %vm954_vm13, %vm955_vm14 }
  0x68   : > { %v950_v8 = vmul.f32 %v1334_v5, %v949_v7 }
  0x6a   : > { %v951_v9 = vmul.f32 0.5, %v950_v8  ;;  %v982_v8 = vld [vmem:[%s1703_s13 + $0x30] sm:$0xff] }
  0x6c   : > { %v952_v13 = vsub.f32 1.5, %v951_v9  ;;  %v977_v9 = vld [vmem:[%s1703_s13 + $0x8] sm:$0xff] }
  0x6e   : > { %v953_v17 = vmul.f32 %v1334_v5, %v952_v13 }
  0x70   : > { %v957_v24 = vsel %vm956_vm15, %v1334_v5, %v953_v17 }
  0x95   : > { %v742_v31 = vpop.permute.xlu2 %741 }
  0x96   : > { %v775_v34 = vsel %vm769_vm10, %v707_v33, %v742_v31  ;;  %v978_v31 = vld [vmem:[%s1703_s13 + $0x10] sm:$0xff] }
  0x9d   : > { %v760_v37 = vpop.permute.xlu2 %759 }
  0x9e   : > { %v792_v38 = vsel %vm788_vm11, %v775_v34, %v760_v37 }
  0x9f   : > { %1241 = vmatmul.msk.bf16.vlgmr.msra.gmra.mxu1 %vm812_vm12, %v792_v38  ;;  %1232 = vmatmul.msk.bf16.vlgmr.msra.gmra.mxu0 %vm812_vm12, %v792_v38 }
  0xa0   : > { %910 = vmatpush.bf16.msra.mxu0 %v901_v29  ;;  %v1705_v29 = vperm.slane %v957_v24, 1 }
  0xa5   : > { %v740_v53 = vpop.permute.xlu2 %739 }
  0xa6   : > { %v772_v57 = vsel %vm769_vm10, %v706_v54, %v740_v53 }
  0xac   : > { %v746_v41 = vpop.permute.xlu1 %745  ;;  %v744_v43 = vpop.permute.xlu0 %743 }
  0xad   : > { %v781_v47 = vsel %vm769_vm10, %v709_v45, %v746_v41  ;;  %v778_v48 = vsel %vm769_vm10, %v708_v46, %v744_v43  ;;  %v768_v62 = vpop.permute.xlu2 %767 }
  0xb4   : > { %v764_v15 = vpop.permute.xlu1 %763  ;;  %v762_v6 = vpop.permute.xlu0 %761 }
  0xb5   : > { %v796_v16 = vsel %vm788_vm11, %v781_v47, %v764_v15  ;;  %v794_v10 = vsel %vm788_vm11, %v778_v48, %v762_v6 }
  0xb6   : > { %1249 = vmatmul.msk.bf16.vlgmr.msra.gmra.mxu2 %vm812_vm12, %v796_v16  ;;  %1233 = vmatmul.msk.bf16.vlgmr.msra.gmra.mxu3 %vm812_vm12, %v794_v10 }
  0xb7   : > { %1242 = vmatmul.msk.bf16.gmra.mxu1 %vm812_vm12, %v794_v10 }
  0xbc   : > { %v748_v51 = vpop.permute.xlu0 %747  ;;  %v766_v56 = vpop.permute.xlu1 %765 }
  0xbd   : > { %v784_v11 = vsel %vm769_vm10, %v710_v50, %v748_v51 }
  0xbe   : > { %v798_v58 = vsel %vm788_vm11, %v784_v11, %v766_v56 }
  0xc4   : > { %v758_v32 = vpop.permute.xlu0 %757  ;;  %v750_v59 = vpop.permute.xlu1 %749 }
  0xc5   : > { %v790_v52 = vsel %vm788_vm11, %v772_v57, %v758_v32  ;;  %v787_v61 = vsel %vm769_vm10, %v711_v60, %v750_v59 }
  0xc6   : > { %1250 = vmatmul.msk.bf16.gmra.mxu2 %vm812_vm12, %v798_v58  ;;  %1234 = vmatmul.msk.bf16.gmra.mxu3 %vm812_vm12, %v796_v16  ;;  %v800_v35 = vsel %vm788_vm11, %v787_v61, %v768_v62 }
  0xc7   : > { %1240 = vmatmul.msk.bf16.vlgmr.msrb.gmra.mxu0 %vm812_vm12, %v790_v52  ;;  %1243 = vmatmul.msk.bf16.gmra.mxu1 %vm812_vm12, %v796_v16  ;;  %v981_v52 = vld [vmem:[%s1703_s13 + $0x28] sm:$0xff] }
  0xd6   : > { %1251 = vmatmul.msk.bf16.gmra.mxu2 %vm812_vm12, %v800_v35  ;;  %1235 = vmatmul.msk.bf16.gmra.mxu3 %vm812_vm12, %v798_v58 }
  0xd7   : > { %1248 = vmatmul.msk.bf16.vlgmr.msra.gmra.mxu0 %vm812_vm12, %v794_v10 }
 0x11c   : > { %v878_v12 = vpop.f32.mrf.mxu1  ;;  %v834_v14 = vpop.f32.mrf.mxu0 }
 0x124   : > { %v880_v19 = vpop.f32.mrf.mxu1  ;;  %v836_v27 = vpop.f32.mrf.mxu0 }
 0x134   : > { %v883_v40 = vpop.f32.mrf.mxu1 }
 0x139   : > { %v917_v18 = vpop.f32.mrf.mxu2  ;;  %v839_v23 = vpop.f32.mrf.mxu3 }
 0x13a   : > { %v879_v26 = vadd.f32 %v878_v12, %v839_v23 }
 0x13c   : > { %v934_v28 = vadd.f32 %v917_v18, %v879_v26  ;;  %v885_v16 = vpop.f32.mrf.mxu1 }
 0x13e   : > { %v961_v30 = vsub.f32 %v934_v28, %v1698_v25  ;;  %v983_v28 = vld [vmem:[%s1703_s13 + $0x38] sm:$0xff] }
 0x140   : > { %v970_v33 = vmul.f32 %v1705_v29, %v961_v30 }
 0x141   : > { %v919_v34 = vpop.f32.mrf.mxu2  ;;  %v841_v37 = vpop.f32.mrf.mxu3 }
 0x142   : > { %v986_v38 = vadd.f32 %v978_v31, %v970_v33  ;;  %v881_v39 = vadd.f32 %v880_v19, %v841_v37 }
 0x144   : > { %v873_v41 = vpop.f32.mrf.mxu0  ;;  %994 = vst.msk [vmem:[%s1713_s8 + $0x10] sm:$0xff] %vm769_vm10, %v986_v38  ;;  %v935_v42 = vadd.f32 %v919_v34, %v881_v39  ;;  %v888_v32 = vpop.f32.mrf.mxu1 }
 0x145   : > { %v874_v51 = vadd.f32 %v873_v41, %v834_v14 }
 0x146   : > { %v962_v43 = vsub.f32 %v935_v42, %v1698_v25 }
 0x148   : > { %v971_v45 = vmul.f32 %v1705_v29, %v962_v43 }
 0x149   : > { %v922_v46 = vpop.f32.mrf.mxu2  ;;  %v844_v47 = vpop.f32.mrf.mxu3 }
 0x14a   : > { %v987_v15 = vadd.f32 %v979_v44, %v971_v45  ;;  %v884_v20 = vadd.f32 %v883_v40, %v844_v47 }
 0x14c   : > { %v875_v48 = vpop.f32.mrf.mxu0  ;;  %995 = vst.msk [vmem:[%s1713_s8 + $0x18] sm:$0xff] %vm769_vm10, %v987_v15  ;;  %v936_v6 = vadd.f32 %v922_v46, %v884_v20  ;;  %v890_v14 = vpop.f32.mrf.mxu1 }
 0x14d   : > { %v876_v35 = vadd.f32 %v875_v48, %v836_v27 }
 0x14e   : > { %v963_v10 = vsub.f32 %v936_v6, %v1698_v25 }
 0x150   : > { %v972_v49 = vmul.f32 %v1705_v29, %v963_v10 }
 0x151   : > { %v924_v36 = vpop.f32.mrf.mxu2  ;;  %v846_v50 = vpop.f32.mrf.mxu3 }
 0x152   : > { %v988_v11 = vadd.f32 %v980_v21, %v972_v49  ;;  %v886_v53 = vadd.f32 %v885_v16, %v846_v50 }
 0x154   : > { %v912_v54 = vpop.f32.mrf.mxu0  ;;  %996 = vst.msk [vmem:[%s1713_s8 + $0x20] sm:$0xff] %vm769_vm10, %v988_v11  ;;  %v937_v56 = vadd.f32 %v924_v36, %v886_v53 }
 0x155   : > { %v932_v57 = vadd.f32 %v912_v54, %v874_v51 }
 0x156   : > { %v964_v58 = vsub.f32 %v937_v56, %v1698_v25 }
 0x157   : > { %v959_v22 = vsub.f32 %v932_v57, %v1698_v25 }
 0x158   : > { %v973_v59 = vmul.f32 %v1705_v29, %v964_v58 }
 0x159   : > { %v968_v60 = vmul.f32 %v1705_v29, %v959_v22  ;;  %v849_v61 = vpop.f32.mrf.mxu3  ;;  %v927_v62 = vpop.f32.mrf.mxu2 }
 0x15a   : > { %v989_v63 = vadd.f32 %v981_v52, %v973_v59  ;;  %v889_v1 = vadd.f32 %v888_v32, %v849_v61 }
 0x15b   : > { %v984_v0 = vadd.f32 %v976_v55, %v968_v60 }
 0x15c   : > { %v914_v2 = vpop.f32.mrf.mxu0  ;;  %997 = vst.msk [vmem:[%s1713_s8 + $0x28] sm:$0xff] %vm769_vm10, %v989_v63  ;;  %v938_v3 = vadd.f32 %v927_v62, %v889_v1 }
 0x15d   : > { %v933_v4 = vadd.f32 %v914_v2, %v876_v35  ;;  %992 = vst.msk [vmem:[%s1713_s8] sm:$0xff] %vm769_vm10, %v984_v0 }
 0x15e   : > { %v965_v5 = vsub.f32 %v938_v3, %v1698_v25 }
 0x15f   : > { %v960_v7 = vsub.f32 %v933_v4, %v1698_v25 }
 0x160   : > { %v974_v12 = vmul.f32 %v1705_v29, %v965_v5 }
 0x161   : > { %v969_v13 = vmul.f32 %v1705_v29, %v960_v7  ;;  %v851_v17 = vpop.f32.mrf.mxu3  ;;  %v929_v24 = vpop.f32.mrf.mxu2 }
 0x162   : > { %v990_v18 = vadd.f32 %v982_v8, %v974_v12  ;;  %v891_v23 = vadd.f32 %v890_v14, %v851_v17 }
 0x163   : > { %v985_v19 = vadd.f32 %v977_v9, %v969_v13 }
 0x164   : > { %998 = vst.msk [vmem:[%s1713_s8 + $0x30] sm:$0xff] %vm769_vm10, %v990_v18  ;;  %v939_v26 = vadd.f32 %v929_v24, %v891_v23 }
 0x165   : > { %993 = vst.msk [vmem:[%s1713_s8 + $0x8] sm:$0xff] %vm769_vm10, %v985_v19 }
 0x166   : > { %v966_v27 = vsub.f32 %v939_v26, %v1698_v25 }
 0x168   : > { %v975_v30 = vmul.f32 %v1705_v29, %v966_v27 }
 0x16a   : > { %v991_v31 = vadd.f32 %v983_v28, %v975_v30 }
 0x16c   : > { %999 = vst.msk [vmem:[%s1713_s8 + $0x38] sm:$0xff] %vm769_vm10, %v991_v31 }
 0x16d PF: > { %s17_s28 = sadd.s32 1, %s1373_s28   ;;  %s1780_s24 = smov %s1365_s26 }
 0x16e   : > { %p14_p12 = scmp.ge.s32.totalorder %s17_s28, 10   ;;  %s1781_s25 = smov %s1369_s27 }
 0x16f   : > { %s1782_s26 = smov %s1785_s29  ;;  %s1783_s27 = smov %s1789_s30 }
 0x170   :  { %16 = sbr.rel (!%p14_p12) target bundleno = 3 (0x3), region = 93 }

</bundles_post_ra>
